<compile_context>
chip_gen: v7x
topology: tpu7x:2x2x1
jax: 0.10.0
libtpu: 0.0.40
codegen_flags: <defaults>
</compile_context>

<pallas_src>
import functools

import numpy as np
import jax
import jax.numpy as jnp
from jax.experimental import pallas as pl
from jax.experimental.pallas import tpu as pltpu

LANES = 128


def _cdiv(a, b):
    return -(-a // b)


def _round_up(a, b):
    return _cdiv(a, b) * b


def _tpu_vmem_capacity_bytes():
    try:
        info = pltpu.get_tpu_info()
        cap = getattr(info, "vmem_capacity_bytes", None)
        if cap:
            return int(cap)
    except Exception:
        pass
    return 64 * 1024 * 1024          # assume the smallest (v7x per-TC) budget


def _dice_stats_kernel(x_ref, y_ref, inter_ref, spred_ref, sgt_ref, *,
                       apply_softmax, full_rows, rem_lanes,
                       blocks_per_shard, compute_dtype):
    """Accumulate lane-partial per-(b, c) intersect / sum_pred / sum_gt.

    x_ref: (1, C, S, 128) logits/probs block (native dtype, upcast in-kernel)
    y_ref: (1, 1, S, 128) integer label block
    *_ref: (1, 1, C, 128) f32 lane-partial accumulators, VMEM-resident across t
    """
    g = pl.program_id(1)
    t = pl.program_id(2)

    @pl.when(t == 0)
    def _init():
        inter_ref[...] = jnp.zeros_like(inter_ref)
        spred_ref[...] = jnp.zeros_like(spred_ref)
        sgt_ref[...] = jnp.zeros_like(sgt_ref)

    x = x_ref[0].astype(compute_dtype)          # (C, S, 128), cast in-kernel
    labels = y_ref[0].astype(jnp.int32)         # (1, S, 128)
    C, S, L = x.shape
    zero = jnp.zeros((), x.dtype)

    if apply_softmax:
        m = jnp.max(x, axis=0, keepdims=True)
        e = jnp.exp(x - m)
        denom = jnp.sum(e, axis=0, keepdims=True)
        # EUP reciprocal (free slot); one Newton step in f32 keeps the relative
        # error well under 1e-6 and only touches the (1, S, 128) denominator.
        d32 = denom.astype(jnp.float32)
        r32 = pl.reciprocal(d32, approx=True)
        r32 = r32 * (2.0 - d32 * r32)
        x = e * r32.astype(x.dtype)

    ch = jax.lax.broadcasted_iota(jnp.int32, (C, S, L), 0)
    row0 = (g * blocks_per_shard + t) * S       # first global 128-voxel row of block

    def accumulate(xv, lab):
        onehot = ch == lab                      # (C, S, 128) bool; no HBM one-hot
        # Explicit f32 upcast of the partial sums (bf16 compute path stays exact).
        inter_ref[0, 0] += jnp.sum(jnp.where(onehot, xv, zero).astype(jnp.float32),
                                   axis=1)
        spred_ref[0, 0] += jnp.sum(xv.astype(jnp.float32), axis=1)
        sgt_ref[0, 0] += jnp.sum(onehot.astype(jnp.float32), axis=1)

    @pl.when(row0 + S <= full_rows)
    def _interior():                            # fully valid block: no masking
        accumulate(x, labels)

    @pl.when(row0 + S > full_rows)
    def _tail():                                # ragged tail / clamped overshoot
        s_idx = jax.lax.broadcasted_iota(jnp.int32, (1, S, L), 1)
        l_idx = jax.lax.broadcasted_iota(jnp.int32, (1, S, L), 2)
        row = row0 + s_idx                      # row/lane test: no int32 overflow
        valid = (row < full_rows) | ((row == full_rows) & (l_idx < rem_lanes))
        lab_m = jnp.where(valid, labels, -1)    # (1,S,128): never matches a class
        x_m = jnp.where(valid, x, zero)         # single shared (C,S,128) select
        accumulate(x_m, lab_m)


def memory_efficient_soft_dice_loss(x, y, *, batch_dice=True, do_bg=True,
                                    smooth=1e-5, softmax=False,
                                    block_bytes=2 << 20, spatial_shards=None,
                                    compute_dtype=None):
    """x: (B, C, *spatial) logits/probs (any float dtype); y: (B, *spatial) int labels."""
    B, C = x.shape[:2]
    spatial = x.shape[2:]
    N = int(np.prod(spatial))
    assert y.shape == (B,) + tuple(spatial), "y must be an integer class map"

    if not jnp.issubdtype(y.dtype, jnp.integer):
        y = y.astype(jnp.int32)
    if compute_dtype is None:
        # bf16 math keeps the VALU-bound softmax path 2x-packed on v6e/v7x.
        # TODO(synk): force f32 here on v5e (no bf16 VALU/EUP) once generation
        # detection is plumbed through; bf16 still compiles there, just slower.
        compute_dtype = jnp.bfloat16 if x.dtype == jnp.bfloat16 else jnp.float32

    x_itemsize = jnp.dtype(x.dtype).itemsize
    y_itemsize = jnp.dtype(y.dtype).itemsize
    sub_q = max(32 // x_itemsize, 32 // y_itemsize, 8)   # native sublane tiling quantum

    # --- spatial re-blocking (B, C, R, 128): minimal 128-lane pad only if needed ---
    full_rows, rem_lanes = divmod(N, LANES)
    R = full_rows + (1 if rem_lanes else 0)
    x_flat = x.reshape(B, C, N)                 # free reshapes; native dtypes in HBM
    y_flat = y.reshape(B, 1, N)
    if rem_lanes:
        # TODO(synk): pad spatial size to a 128 multiple at the data producer;
        # even this minimal (<128 voxel) pad costs one extra HBM pass over x.
        pad = LANES - rem_lanes
        x_flat = jnp.pad(x_flat, ((0, 0), (0, 0), (0, pad)))
        y_flat = jnp.pad(y_flat, ((0, 0), (0, 0), (0, pad)))
    x_blk = x_flat.reshape(B, C, R, LANES)
    y_blk = y_flat.reshape(B, 1, R, LANES)

    # --- shard axis: only to feed a second TensorCore (v7x) when B alone cannot ---
    if spatial_shards is None:
        spatial_shards = 1 if B % 2 == 0 else 2
    G = int(max(1, spatial_shards))

    # --- tile rows from a byte budget (1-4 MiB x block => ~85% of HBM roofline) ---
    rows_per_shard = _cdiv(R, G)
    cap_rows = max(sub_q, (8 << 20) // (C * LANES * x_itemsize))   # <= 8 MiB / buffer
    S = block_bytes // (C * LANES * x_itemsize)
    S = min(S, _round_up(rows_per_shard, sub_q), cap_rows)
    S = max(sub_q, (S // sub_q) * sub_q)

    total_blocks = _cdiv(R, S)
    G = min(G, total_blocks)
    T = _cdiv(total_blocks, G)
    last_block = total_blocks - 1

    # --- generation-aware VMEM budget (v7x: 64 MiB physical per TensorCore) ---
    phys = _tpu_vmem_capacity_bytes()
    ceiling = (40 << 20) if phys <= (64 << 20) else (64 << 20)
    buf_bytes = (2 * (C * S * LANES * x_itemsize + S * LANES * y_itemsize)
                 + 2 * 3 * C * LANES * 4)
    vmem_limit = int(min(ceiling, max(32 << 20, 4 * buf_bytes)))

    kernel = functools.partial(
        _dice_stats_kernel, apply_softmax=softmax, full_rows=full_rows,
        rem_lanes=rem_lanes, blocks_per_shard=T, compute_dtype=compute_dtype)

    stat_shape = jax.ShapeDtypeStruct((B, G, C, LANES), jnp.float32)
    stat_spec = pl.BlockSpec((1, 1, C, LANES), lambda b, g, t: (b, g, 0, 0))
    # Clamp the block index: a (g, t) step past the last block re-reads the last
    # block; its rows fail the in-kernel validity test and contribute zero.
    x_spec = pl.BlockSpec(
        (1, C, S, LANES),
        lambda b, g, t: (b, 0, jnp.minimum(g * T + t, last_block), 0))
    y_spec = pl.BlockSpec(
        (1, 1, S, LANES),
        lambda b, g, t: (b, 0, jnp.minimum(g * T + t, last_block), 0))

    intersect, sum_pred, sum_gt = pl.pallas_call(
        kernel,
        out_shape=[stat_shape, stat_shape, stat_shape],
        grid_spec=pltpu.PrefetchScalarGridSpec(
            num_scalar_prefetch=0,
            grid=(B, G, T),
            in_specs=[x_spec, y_spec],
            out_specs=[stat_spec, stat_spec, stat_spec],
        ),
        compiler_params=pltpu.CompilerParams(
            dimension_semantics=("parallel", "parallel", "arbitrary"),
            vmem_limit_bytes=vmem_limit),
    )(x_blk, y_blk)

    # Final tiny reductions (shards + 128 lane-partials) in plain JAX.
    intersect = intersect.sum(axis=(1, 3))      # (B, C)
    sum_pred = sum_pred.sum(axis=(1, 3))
    sum_gt = sum_gt.sum(axis=(1, 3))

    if not do_bg:
        intersect = intersect[:, 1:]
        sum_pred = sum_pred[:, 1:]
        sum_gt = sum_gt[:, 1:]

    if batch_dice:
        intersect = intersect.sum(0)
        sum_pred = sum_pred.sum(0)
        sum_gt = sum_gt.sum(0)

    dc = (2.0 * intersect + smooth) / jnp.clip(sum_gt + sum_pred + smooth, 1e-8)
    return -dc.mean()


def _reference_loss(x, y, *, batch_dice=True, do_bg=True, smooth=1e-5, softmax=False):
    """Pure-JAX re-implementation of the PyTorch forward (label-map y path)."""
    C = x.shape[1]
    xp = jax.nn.softmax(x.astype(jnp.float32), axis=1) if softmax else x.astype(jnp.float32)
    y_onehot = jax.nn.one_hot(y, C, axis=1, dtype=xp.dtype)   # (B, C, *spatial)
    if not do_bg:
        xp = xp[:, 1:]
        y_onehot = y_onehot[:, 1:]
    axes = tuple(range(2, x.ndim))
    intersect = (xp * y_onehot).sum(axes)
    sum_pred = xp.sum(axes)
    sum_gt = y_onehot.sum(axes)
    if batch_dice:
        intersect = intersect.sum(0)
        sum_pred = sum_pred.sum(0)
        sum_gt = sum_gt.sum(0)
    dc = (2.0 * intersect + smooth) / jnp.clip(sum_gt + sum_pred + smooth, 1e-8)
    return -dc.mean()


if __name__ == "__main__":
    key = jax.random.PRNGKey(0)
    kx, ky = jax.random.split(key)

    # N = 8*36*35 = 10080 voxels: not a 128 multiple, so the minimal lane pad,
    # the Pallas ragged edge block, and the masked tail path are all exercised.
    B, C, Z, Y, X = 2, 4, 8, 36, 35
    x = jax.random.normal(kx, (B, C, Z, Y, X), dtype=jnp.float32)
    y = jax.random.randint(ky, (B, Z, Y, X), 0, C, dtype=jnp.int32).astype(jnp.int8)

    # Case 1: logits + softmax, batch dice, keep background. Small block budget so
    # the grid runs several reduction steps (interior fast path + masked tail).
    loss1 = jax.block_until_ready(memory_efficient_soft_dice_loss(
        x, y, batch_dice=True, do_bg=True, smooth=1e-5, softmax=True,
        block_bytes=64 * 1024))
    ref1 = jax.block_until_ready(_reference_loss(
        x, y, batch_dice=True, do_bg=True, smooth=1e-5, softmax=True))
    np.testing.assert_allclose(np.asarray(loss1), np.asarray(ref1),
                               rtol=1e-4, atol=1e-6)

    # Case 2: probabilities in, per-sample dice, drop background, two spatial
    # shards (exercises the parallel shard axis and the clamped overshoot step).
    xp = jax.nn.softmax(x, axis=1)
    loss2 = jax.block_until_ready(memory_efficient_soft_dice_loss(
        xp, y, batch_dice=False, do_bg=False, smooth=1e-5, softmax=False,
        block_bytes=64 * 1024, spatial_shards=2))
    ref2 = jax.block_until_ready(_reference_loss(
        xp, y, batch_dice=False, do_bg=False, smooth=1e-5, softmax=False))
    np.testing.assert_allclose(np.asarray(loss2), np.asarray(ref2),
                               rtol=5e-5, atol=1e-6)

    # Case 3: default (big-tile) configuration with softmax.
    loss3 = jax.block_until_ready(memory_efficient_soft_dice_loss(
        x, y, batch_dice=True, do_bg=True, smooth=1e-5, softmax=True))
    np.testing.assert_allclose(np.asarray(loss3), np.asarray(ref1),
                               rtol=1e-4, atol=1e-6)

    # Case 4: bf16 probabilities (bf16 compute path; f32 accumulation).
    xb = xp.astype(jnp.bfloat16)
    loss4 = jax.block_until_ready(memory_efficient_soft_dice_loss(
        xb, y, batch_dice=True, do_bg=True, smooth=1e-5, softmax=False))
    ref4 = jax.block_until_ready(_reference_loss(
        xb, y, batch_dice=True, do_bg=True, smooth=1e-5, softmax=False))
    np.testing.assert_allclose(np.asarray(loss4), np.asarray(ref4),
                               rtol=5e-5, atol=1e-6)

    # Case 5: bf16 logits with in-kernel bf16 softmax (looser tolerance: the
    # reference computes the softmax in f32).
    xl = x.astype(jnp.bfloat16)
    loss5 = jax.block_until_ready(memory_efficient_soft_dice_loss(
        xl, y, batch_dice=True, do_bg=True, smooth=1e-5, softmax=True))
    ref5 = jax.block_until_ready(_reference_loss(
        xl, y, batch_dice=True, do_bg=True, smooth=1e-5, softmax=True))
    np.testing.assert_allclose(np.asarray(loss5), np.asarray(ref5),
                               rtol=3e-2, atol=2e-3)

    print("KERNEL_OK")
</pallas_src>

<mosaic_0001>
module attributes {stable_mosaic.version = 11 : i64} {
  func.func @_dice_stats_kernel(%arg0: i32, %arg1: i32, %arg2: i32, %arg3: memref<1x4x32x128xf32, #tpu.memory_space<vmem>>, %arg4: memref<1x1x32x128xi8, #tpu.memory_space<vmem>>, %arg5: memref<1x1x4x128xf32, #tpu.memory_space<vmem>>, %arg6: memref<1x1x4x128xf32, #tpu.memory_space<vmem>>, %arg7: memref<1x1x4x128xf32, #tpu.memory_space<vmem>>) attributes {dimension_semantics = [#tpu.dimension_semantics<parallel>, #tpu.dimension_semantics<parallel>, #tpu.dimension_semantics<arbitrary>], iteration_bounds = array<i64: 2, 1, 3>, scalar_prefetch = 0 : i64, scratch_operands = 0 : i64, tpu.core_type = #tpu.core_type<tc>, window_params = [{transform_indices = @transform_0, window_bounds = array<i64: 1, 4, 32, 128>}, {transform_indices = @transform_1, window_bounds = array<i64: 1, 1, 32, 128>}, {transform_indices = @transform_2, window_bounds = array<i64: 1, 1, 4, 128>}, {transform_indices = @transform_3, window_bounds = array<i64: 1, 1, 4, 128>}, {transform_indices = @transform_4, window_bounds = array<i64: 1, 1, 4, 128>}]} {
    %c0_i32 = arith.constant 0 : i32
    %0 = arith.cmpi eq, %arg2, %c0_i32 : i32
    %1 = arith.extui %0 : i1 to i32
    %c0_i32_0 = arith.constant 0 : i32
    %2 = arith.cmpi ne, %1, %c0_i32_0 : i32
    scf.if %2 {
      %cst_17 = arith.constant 0.000000e+00 : f32
      %34 = vector.broadcast %cst_17 : f32 to vector<1x1x4x128xf32>
      %c0_18 = arith.constant 0 : index
      %c0_19 = arith.constant 0 : index
      %c0_20 = arith.constant 0 : index
      %c0_21 = arith.constant 0 : index
      %35 = vector.load %arg5[%c0_18, %c0_19, %c0_20, %c0_21] : memref<1x1x4x128xf32, #tpu.memory_space<vmem>>, vector<1x1x4x128xf32>
      tpu.vector_store %arg5[%c0_18, %c0_19, %c0_20, %c0_21], %34 {strides = array<i32>} : memref<1x1x4x128xf32, #tpu.memory_space<vmem>>, vector<1x1x4x128xf32>,
      %cst_22 = arith.constant 0.000000e+00 : f32
      %36 = vector.broadcast %cst_22 : f32 to vector<1x1x4x128xf32>
      %c0_23 = arith.constant 0 : index
      %c0_24 = arith.constant 0 : index
      %c0_25 = arith.constant 0 : index
      %c0_26 = arith.constant 0 : index
      %37 = vector.load %arg6[%c0_23, %c0_24, %c0_25, %c0_26] : memref<1x1x4x128xf32, #tpu.memory_space<vmem>>, vector<1x1x4x128xf32>
      tpu.vector_store %arg6[%c0_23, %c0_24, %c0_25, %c0_26], %36 {strides = array<i32>} : memref<1x1x4x128xf32, #tpu.memory_space<vmem>>, vector<1x1x4x128xf32>,
      %cst_27 = arith.constant 0.000000e+00 : f32
      %38 = vector.broadcast %cst_27 : f32 to vector<1x1x4x128xf32>
      %c0_28 = arith.constant 0 : index
      %c0_29 = arith.constant 0 : index
      %c0_30 = arith.constant 0 : index
      %c0_31 = arith.constant 0 : index
      %39 = vector.load %arg7[%c0_28, %c0_29, %c0_30, %c0_31] : memref<1x1x4x128xf32, #tpu.memory_space<vmem>>, vector<1x1x4x128xf32>
      tpu.vector_store %arg7[%c0_28, %c0_29, %c0_30, %c0_31], %38 {strides = array<i32>} : memref<1x1x4x128xf32, #tpu.memory_space<vmem>>, vector<1x1x4x128xf32>,
    } else {
    }
    %c0 = arith.constant 0 : index
    %c0_1 = arith.constant 0 : index
    %c0_2 = arith.constant 0 : index
    %c0_3 = arith.constant 0 : index
    %3 = vector.load %arg3[%c0, %c0_1, %c0_2, %c0_3] : memref<1x4x32x128xf32, #tpu.memory_space<vmem>>, vector<1x4x32x128xf32>
    %4 = vector.shape_cast %3 : vector<1x4x32x128xf32> to vector<4x32x128xf32>
    %c0_4 = arith.constant 0 : index
    %c0_5 = arith.constant 0 : index
    %c0_6 = arith.constant 0 : index
    %c0_7 = arith.constant 0 : index
    %5 = vector.load %arg4[%c0_4, %c0_5, %c0_6, %c0_7] : memref<1x1x32x128xi8, #tpu.memory_space<vmem>>, vector<1x1x32x128xi8>
    %6 = vector.shape_cast %5 : vector<1x1x32x128xi8> to vector<1x32x128xi8>
    %7 = arith.extsi %6 : vector<1x32x128xi8> to vector<1x32x128xi32>
    %cst = arith.constant dense<0xFF800000> : vector<32x128xf32>
    %8 = vector.multi_reduction <maximumf>, %4, %cst [0] : vector<4x32x128xf32> to vector<32x128xf32>
    %9 = vector.shape_cast %8 : vector<32x128xf32> to vector<1x32x128xf32>
    %10 = vector.broadcast %9 : vector<1x32x128xf32> to vector<4x32x128xf32>
    %11 = arith.subf %4, %10 : vector<4x32x128xf32>
    %12 = math.exp %11 : vector<4x32x128xf32>
    %cst_8 = arith.constant dense<0.000000e+00> : vector<32x128xf32>
    %13 = vector.multi_reduction <add>, %12, %cst_8 [0] : vector<4x32x128xf32> to vector<32x128xf32>
    %14 = vector.shape_cast %13 : vector<32x128xf32> to vector<1x32x128xf32>
    %15 = tpu.reciprocal %14 {approx = true} : vector<1x32x128xf32> -> vector<1x32x128xf32>
    %16 = arith.mulf %14, %15 : vector<1x32x128xf32>
    %cst_9 = arith.constant 2.000000e+00 : f32
    %17 = vector.broadcast %cst_9 : f32 to vector<1x32x128xf32>
    %18 = arith.subf %17, %16 : vector<1x32x128xf32>
    %19 = arith.mulf %15, %18 : vector<1x32x128xf32>
    %20 = vector.broadcast %19 : vector<1x32x128xf32> to vector<4x32x128xf32>
    %21 = arith.mulf %12, %20 : vector<4x32x128xf32>
    %22 = tpu.iota {dimensions = array<i32: 0>} : vector<4x32x128xi32>
    %c3_i32 = arith.constant 3 : i32
    %23 = arith.muli %arg1, %c3_i32 : i32
    %24 = arith.addi %23, %arg2 : i32
    %c32_i32 = arith.constant 32 : i32
    %25 = arith.muli %24, %c32_i32 : i32
    %c32_i32_10 = arith.constant 32 : i32
    %26 = arith.addi %25, %c32_i32_10 : i32
    %c78_i32 = arith.constant 78 : i32
    %27 = arith.cmpi sle, %26, %c78_i32 : i32
    %28 = arith.extui %27 : i1 to i32
    %cst_11 = arith.constant 0.000000e+00 : f32
    %c0_i32_12 = arith.constant 0 : i32
    %29 = arith.cmpi ne, %28, %c0_i32_12 : i32
    scf.if %29 {
      %34 = vector.broadcast %7 : vector<1x32x128xi32> to vector<4x32x128xi32>
      %35 = arith.cmpi eq, %22, %34 : vector<4x32x128xi32>
      %c0_17 = arith.constant 0 : index
      %c0_18 = arith.constant 0 : index
      %c0_19 = arith.constant 0 : index
      %c0_20 = arith.constant 0 : index
      %36 = vector.load %arg5[%c0_17, %c0_18, %c0_19, %c0_20] : memref<1x1x4x128xf32, #tpu.memory_space<vmem>>, vector<1x1x4x128xf32>
      %37 = vector.shape_cast %36 : vector<1x1x4x128xf32> to vector<4x128xf32>
      %38 = vector.broadcast %cst_11 : f32 to vector<4x32x128xf32>
      %39 = arith.select %35, %21, %38 : vector<4x32x128xi1>, vector<4x32x128xf32>
      %cst_21 = arith.constant dense<0.000000e+00> : vector<4x128xf32>
      %40 = vector.multi_reduction <add>, %39, %cst_21 [1] : vector<4x32x128xf32> to vector<4x128xf32>
      %41 = arith.addf %37, %40 : vector<4x128xf32>
      %c0_22 = arith.constant 0 : index
      %c0_23 = arith.constant 0 : index
      %c0_24 = arith.constant 0 : index
      %c0_25 = arith.constant 0 : index
      %42 = vector.load %arg5[%c0_22, %c0_23, %c0_24, %c0_25] : memref<1x1x4x128xf32, #tpu.memory_space<vmem>>, vector<1x1x4x128xf32>
      %43 = vector.shape_cast %42 : vector<1x1x4x128xf32> to vector<4x128xf32>
      %44 = vector.shape_cast %41 : vector<4x128xf32> to vector<1x1x4x128xf32>
      tpu.vector_store %arg5[%c0_22, %c0_23, %c0_24, %c0_25], %44 {strides = array<i32>} : memref<1x1x4x128xf32, #tpu.memory_space<vmem>>, vector<1x1x4x128xf32>,
      %c0_26 = arith.constant 0 : index
      %c0_27 = arith.constant 0 : index
      %c0_28 = arith.constant 0 : index
      %c0_29 = arith.constant 0 : index
      %45 = vector.load %arg6[%c0_26, %c0_27, %c0_28, %c0_29] : memref<1x1x4x128xf32, #tpu.memory_space<vmem>>, vector<1x1x4x128xf32>
      %46 = vector.shape_cast %45 : vector<1x1x4x128xf32> to vector<4x128xf32>
      %cst_30 = arith.constant dense<0.000000e+00> : vector<4x128xf32>
      %47 = vector.multi_reduction <add>, %21, %cst_30 [1] : vector<4x32x128xf32> to vector<4x128xf32>
      %48 = arith.addf %46, %47 : vector<4x128xf32>
      %c0_31 = arith.constant 0 : index
      %c0_32 = arith.constant 0 : index
      %c0_33 = arith.constant 0 : index
      %c0_34 = arith.constant 0 : index
      %49 = vector.load %arg6[%c0_31, %c0_32, %c0_33, %c0_34] : memref<1x1x4x128xf32, #tpu.memory_space<vmem>>, vector<1x1x4x128xf32>
      %50 = vector.shape_cast %49 : vector<1x1x4x128xf32> to vector<4x128xf32>
      %51 = vector.shape_cast %48 : vector<4x128xf32> to vector<1x1x4x128xf32>
      tpu.vector_store %arg6[%c0_31, %c0_32, %c0_33, %c0_34], %51 {strides = array<i32>} : memref<1x1x4x128xf32, #tpu.memory_space<vmem>>, vector<1x1x4x128xf32>,
      %c0_35 = arith.constant 0 : index
      %c0_36 = arith.constant 0 : index
      %c0_37 = arith.constant 0 : index
      %c0_38 = arith.constant 0 : index
      %52 = vector.load %arg7[%c0_35, %c0_36, %c0_37, %c0_38] : memref<1x1x4x128xf32, #tpu.memory_space<vmem>>, vector<1x1x4x128xf32>
      %53 = vector.shape_cast %52 : vector<1x1x4x128xf32> to vector<4x128xf32>
      %54 = arith.extui %35 : vector<4x32x128xi1> to vector<4x32x128xi32>
      %55 = arith.sitofp %54 : vector<4x32x128xi32> to vector<4x32x128xf32>
      %cst_39 = arith.constant dense<0.000000e+00> : vector<4x128xf32>
      %56 = vector.multi_reduction <add>, %55, %cst_39 [1] : vector<4x32x128xf32> to vector<4x128xf32>
      %57 = arith.addf %53, %56 : vector<4x128xf32>
      %c0_40 = arith.constant 0 : index
      %c0_41 = arith.constant 0 : index
      %c0_42 = arith.constant 0 : index
      %c0_43 = arith.constant 0 : index
      %58 = vector.load %arg7[%c0_40, %c0_41, %c0_42, %c0_43] : memref<1x1x4x128xf32, #tpu.memory_space<vmem>>, vector<1x1x4x128xf32>
      %59 = vector.shape_cast %58 : vector<1x1x4x128xf32> to vector<4x128xf32>
      %60 = vector.shape_cast %57 : vector<4x128xf32> to vector<1x1x4x128xf32>
      tpu.vector_store %arg7[%c0_40, %c0_41, %c0_42, %c0_43], %60 {strides = array<i32>} : memref<1x1x4x128xf32, #tpu.memory_space<vmem>>, vector<1x1x4x128xf32>,
    } else {
    }
    %c32_i32_13 = arith.constant 32 : i32
    %30 = arith.addi %25, %c32_i32_13 : i32
    %c78_i32_14 = arith.constant 78 : i32
    %31 = arith.cmpi sgt, %30, %c78_i32_14 : i32
    %32 = arith.extui %31 : i1 to i32
    %cst_15 = arith.constant 0.000000e+00 : f32
    %c0_i32_16 = arith.constant 0 : i32
    %33 = arith.cmpi ne, %32, %c0_i32_16 : i32
    scf.if %33 {
      %34 = tpu.iota {dimensions = array<i32: 1>} : vector<1x32x128xi32>
      %35 = tpu.iota {dimensions = array<i32: 2>} : vector<1x32x128xi32>
      %36 = vector.broadcast %25 : i32 to vector<1x32x128xi32>
      %37 = arith.addi %36, %34 : vector<1x32x128xi32>
      %c78_i32_17 = arith.constant 78 : i32
      %38 = vector.broadcast %c78_i32_17 : i32 to vector<1x32x128xi32>
      %39 = arith.cmpi slt, %37, %38 : vector<1x32x128xi32>
      %c78_i32_18 = arith.constant 78 : i32
      %40 = vector.broadcast %c78_i32_18 : i32 to vector<1x32x128xi32>
      %41 = arith.cmpi eq, %37, %40 : vector<1x32x128xi32>
      %c96_i32 = arith.constant 96 : i32
      %42 = vector.broadcast %c96_i32 : i32 to vector<1x32x128xi32>
      %43 = arith.cmpi slt, %35, %42 : vector<1x32x128xi32>
      %44 = arith.andi %41, %43 : vector<1x32x128xi1>
      %45 = arith.ori %39, %44 : vector<1x32x128xi1>
      %c-1_i32 = arith.constant -1 : i32
      %46 = vector.broadcast %c-1_i32 : i32 to vector<1x32x128xi32>
      %47 = arith.select %45, %7, %46 : vector<1x32x128xi1>, vector<1x32x128xi32>
      %48 = vector.shape_cast %45 : vector<1x32x128xi1> to vector<1x32x128xi1>
      %49 = vector.broadcast %48 : vector<1x32x128xi1> to vector<4x32x128xi1>
      %50 = vector.broadcast %cst_15 : f32 to vector<4x32x128xf32>
      %51 = arith.select %49, %21, %50 : vector<4x32x128xi1>, vector<4x32x128xf32>
      %52 = vector.broadcast %47 : vector<1x32x128xi32> to vector<4x32x128xi32>
      %53 = arith.cmpi eq, %22, %52 : vector<4x32x128xi32>
      %c0_19 = arith.constant 0 : index
      %c0_20 = arith.constant 0 : index
      %c0_21 = arith.constant 0 : index
      %c0_22 = arith.constant 0 : index
      %54 = vector.load %arg5[%c0_19, %c0_20, %c0_21, %c0_22] : memref<1x1x4x128xf32, #tpu.memory_space<vmem>>, vector<1x1x4x128xf32>
      %55 = vector.shape_cast %54 : vector<1x1x4x128xf32> to vector<4x128xf32>
      %56 = vector.broadcast %cst_15 : f32 to vector<4x32x128xf32>
      %57 = arith.select %53, %51, %56 : vector<4x32x128xi1>, vector<4x32x128xf32>
      %cst_23 = arith.constant dense<0.000000e+00> : vector<4x128xf32>
      %58 = vector.multi_reduction <add>, %57, %cst_23 [1] : vector<4x32x128xf32> to vector<4x128xf32>
      %59 = arith.addf %55, %58 : vector<4x128xf32>
      %c0_24 = arith.constant 0 : index
      %c0_25 = arith.constant 0 : index
      %c0_26 = arith.constant 0 : index
      %c0_27 = arith.constant 0 : index
      %60 = vector.load %arg5[%c0_24, %c0_25, %c0_26, %c0_27] : memref<1x1x4x128xf32, #tpu.memory_space<vmem>>, vector<1x1x4x128xf32>
      %61 = vector.shape_cast %60 : vector<1x1x4x128xf32> to vector<4x128xf32>
      %62 = vector.shape_cast %59 : vector<4x128xf32> to vector<1x1x4x128xf32>
      tpu.vector_store %arg5[%c0_24, %c0_25, %c0_26, %c0_27], %62 {strides = array<i32>} : memref<1x1x4x128xf32, #tpu.memory_space<vmem>>, vector<1x1x4x128xf32>,
      %c0_28 = arith.constant 0 : index
      %c0_29 = arith.constant 0 : index
      %c0_30 = arith.constant 0 : index
      %c0_31 = arith.constant 0 : index
      %63 = vector.load %arg6[%c0_28, %c0_29, %c0_30, %c0_31] : memref<1x1x4x128xf32, #tpu.memory_space<vmem>>, vector<1x1x4x128xf32>
      %64 = vector.shape_cast %63 : vector<1x1x4x128xf32> to vector<4x128xf32>
      %cst_32 = arith.constant dense<0.000000e+00> : vector<4x128xf32>
      %65 = vector.multi_reduction <add>, %51, %cst_32 [1] : vector<4x32x128xf32> to vector<4x128xf32>
      %66 = arith.addf %64, %65 : vector<4x128xf32>
      %c0_33 = arith.constant 0 : index
      %c0_34 = arith.constant 0 : index
      %c0_35 = arith.constant 0 : index
      %c0_36 = arith.constant 0 : index
      %67 = vector.load %arg6[%c0_33, %c0_34, %c0_35, %c0_36] : memref<1x1x4x128xf32, #tpu.memory_space<vmem>>, vector<1x1x4x128xf32>
      %68 = vector.shape_cast %67 : vector<1x1x4x128xf32> to vector<4x128xf32>
      %69 = vector.shape_cast %66 : vector<4x128xf32> to vector<1x1x4x128xf32>
      tpu.vector_store %arg6[%c0_33, %c0_34, %c0_35, %c0_36], %69 {strides = array<i32>} : memref<1x1x4x128xf32, #tpu.memory_space<vmem>>, vector<1x1x4x128xf32>,
      %c0_37 = arith.constant 0 : index
      %c0_38 = arith.constant 0 : index
      %c0_39 = arith.constant 0 : index
      %c0_40 = arith.constant 0 : index
      %70 = vector.load %arg7[%c0_37, %c0_38, %c0_39, %c0_40] : memref<1x1x4x128xf32, #tpu.memory_space<vmem>>, vector<1x1x4x128xf32>
      %71 = vector.shape_cast %70 : vector<1x1x4x128xf32> to vector<4x128xf32>
      %72 = arith.extui %53 : vector<4x32x128xi1> to vector<4x32x128xi32>
      %73 = arith.sitofp %72 : vector<4x32x128xi32> to vector<4x32x128xf32>
      %cst_41 = arith.constant dense<0.000000e+00> : vector<4x128xf32>
      %74 = vector.multi_reduction <add>, %73, %cst_41 [1] : vector<4x32x128xf32> to vector<4x128xf32>
      %75 = arith.addf %71, %74 : vector<4x128xf32>
      %c0_42 = arith.constant 0 : index
      %c0_43 = arith.constant 0 : index
      %c0_44 = arith.constant 0 : index
      %c0_45 = arith.constant 0 : index
      %76 = vector.load %arg7[%c0_42, %c0_43, %c0_44, %c0_45] : memref<1x1x4x128xf32, #tpu.memory_space<vmem>>, vector<1x1x4x128xf32>
      %77 = vector.shape_cast %76 : vector<1x1x4x128xf32> to vector<4x128xf32>
      %78 = vector.shape_cast %75 : vector<4x128xf32> to vector<1x1x4x128xf32>
      tpu.vector_store %arg7[%c0_42, %c0_43, %c0_44, %c0_45], %78 {strides = array<i32>} : memref<1x1x4x128xf32, #tpu.memory_space<vmem>>, vector<1x1x4x128xf32>,
    } else {
    }
    return
  }
  func.func @transform_0(%arg0: i32, %arg1: i32, %arg2: i32) -> (i32, i32, i32, i32) {
    %c3_i32 = arith.constant 3 : i32
    %0 = arith.muli %arg1, %c3_i32 : i32
    %1 = arith.addi %0, %arg2 : i32
    %c2_i32 = arith.constant 2 : i32
    %2 = arith.minsi %1, %c2_i32 : i32
    %c0_i32 = arith.constant 0 : i32
    %c0_i32_0 = arith.constant 0 : i32
    %c0_i32_1 = arith.constant 0 : i32
    return %arg0, %c0_i32, %2, %c0_i32_0 : i32, i32, i32, i32
  }
  func.func @transform_1(%arg0: i32, %arg1: i32, %arg2: i32) -> (i32, i32, i32, i32) {
    %c3_i32 = arith.constant 3 : i32
    %0 = arith.muli %arg1, %c3_i32 : i32
    %1 = arith.addi %0, %arg2 : i32
    %c2_i32 = arith.constant 2 : i32
    %2 = arith.minsi %1, %c2_i32 : i32
    %c0_i32 = arith.constant 0 : i32
    %c0_i32_0 = arith.constant 0 : i32
    %c0_i32_1 = arith.constant 0 : i32
    return %arg0, %c0_i32, %2, %c0_i32_0 : i32, i32, i32, i32
  }
  func.func @transform_2(%arg0: i32, %arg1: i32, %arg2: i32) -> (i32, i32, i32, i32) {
    %c0_i32 = arith.constant 0 : i32
    %c0_i32_0 = arith.constant 0 : i32
    %c0_i32_1 = arith.constant 0 : i32
    return %arg0, %arg1, %c0_i32, %c0_i32_0 : i32, i32, i32, i32
  }
  func.func @transform_3(%arg0: i32, %arg1: i32, %arg2: i32) -> (i32, i32, i32, i32) {
    %c0_i32 = arith.constant 0 : i32
    %c0_i32_0 = arith.constant 0 : i32
    %c0_i32_1 = arith.constant 0 : i32
    return %arg0, %arg1, %c0_i32, %c0_i32_0 : i32, i32, i32, i32
  }
  func.func @transform_4(%arg0: i32, %arg1: i32, %arg2: i32) -> (i32, i32, i32, i32) {
    %c0_i32 = arith.constant 0 : i32
    %c0_i32_0 = arith.constant 0 : i32
    %c0_i32_1 = arith.constant 0 : i32
    return %arg0, %arg1, %c0_i32, %c0_i32_0 : i32, i32, i32, i32
  }
}

</mosaic_0001>

<bundles_post_ra>
// kernel: tpu_custom_call.1
= control target key start
LH: loop header
LB: loop body
LE: loop exit
PB: predicated region body
PF: predicated region fallthrough
CT: control target
= control target key end

     0   :  { %s2700_s0 = inlined_call_operand.vmem [shape: f32[2,4,79,128], index: 0, kind: input, shape index: {}]   ;;  %s2701_s1 = inlined_call_operand.vmem [shape: s8[2,1,79,128], index: 1, kind: input, shape index: {}]   ;;  %s2702_s2 = inlined_call_operand.hbm [shape: f32[2,1,4,128], index: 2, kind: output, shape index: {0}]   ;;  %s2703_s3 = inlined_call_operand.hbm [shape: f32[2,1,4,128], index: 3, kind: output, shape index: {1}]   ;;  %s2704_s4 = inlined_call_operand.hbm [shape: f32[2,1,4,128], index: 4, kind: output, shape index: {2}]  }
   0x1   :  { %2717 = sst [smem:[#allocation13_spill]] %s2700_s0 }
   0x2   :  { %10 = vsyncpa [#allocation4], 0 }
   0x3   :  { %12 = vsyncpa [#allocation4 + $0x1], 0 }
   0x4   :  { %13 = vsyncpa [#allocation6], 0 }
   0x5   :  { %15 = vsyncpa [#allocation6 + $0x1], 0  ;;  %s1968_s15 = smov 0   ;;  %s1970_s16 = smov 0  }
   0x6   :  { %s1972_s17 = smov 0   ;;  %s1974_s18 = smov 0  }
   0x7   :  { %s1976_s19 = smov 0   ;;  %s1978_s20 = smov 0  }
   0x8   :  { %s1980_s21 = smov 0   ;;  %s1982_s22 = smov 0  }
   0x9   :  { %s1984_s23 = smov 0   ;;  %s1986_s24 = smov 0  }
   0xa LB: > { %2718 = sst [smem:[#allocation10_spill]] %s1895_s22  ;;  %s2706_s25 = sadd.s32 4294967295, %s1903_s24   ;;  %s1903_s24 = sphi %s1986_s24, %s21_s24   ;;  %s1899_s23 = sphi %s1984_s23, %s2754_s23   ;;  %s1895_s22 = sphi %s1982_s22, %s2746_s22   ;;  %s1891_s21 = sphi %s1980_s21, %s2753_s21   ;;  %s1887_s20 = sphi %s1978_s20, %s2745_s20   ;;  %s1883_s19 = sphi %s1976_s19, %s2752_s19   ;;  %s1879_s18 = sphi %s1974_s18, %s2751_s18   ;;  %s1875_s17 = sphi %s1972_s17, %s2750_s17   ;;  %s1871_s16 = sphi %s1970_s16, %s2749_s16   ;;  %s1867_s15 = sphi %s1968_s15, %s2748_s15  }
   0xb   : > { %s2705_s26 = sadd.s32 4294967294, %s1903_s24   ;;  %s33_s27 = sadd.s32 1, %s1895_s22 }
   0xc   : > { %s40_s28 = sadd.s32 1, %s1899_s23  ;;  %p34_p0 = scmp.ge.s32.totalorder %s33_s27, 3 }
   0xd   : > { %p46_p1 = scmp.lt.s32.totalorder %s1895_s22, 2  ;;  %s57_s29 = sadd.s32 1, %s1883_s19 }
   0xe   : > { %p64_p2 = scmp.ne.s32.totalorder %s1883_s19, %s1879_s18  ;;  %s2756_s27 = smov (%p34_p0, %s33_s27), 0 }
   0xf   : > { %2719 = sst [smem:[#allocation11_spill]] %s2756_s27  ;;  %s2758_s28 = smov (!%p34_p0, %s40_s28), %s1899_s23 }
  0x10   : > { %s2030_s30 = scalar_select %p46_p1, %s1895_s22, 2 }
  0x11   : > { %p42_p3 = scmp.ge.s32.totalorder %s2758_s28, 2  ;;  %p50_p4 = scmp.lt.s32.totalorder %s2756_s27, 2 }
  0x12   : > { %p65_p5 = scmp.eq.s32.totalorder %s1903_s24, 0  ;;  %s121_s5 = sadd.s32 1, %s1875_s17 }
  0x13   : > { %s2760_s28 = smov (%p42_p3, %s2758_s28), 0  ;;  %p131_p8 = scmp.ne.s32.totalorder %s1875_s17, %s1871_s16 }
  0x14   : > { %2720 = sst [smem:[#allocation12_spill]] %s2760_s28  ;;  %s52_s7 = ssub.s32 %s1899_s23, %s2760_s28 }
  0x15   : > { %s51_s6 = scalar_select %p50_p4, %s2756_s27, 2 }
  0x16   : > { %p2040_p6 = por %p65_p5, %p64_p2  ;;  %p119_p7 = scmp.eq.s32.totalorder %s52_s7, 0 }
  0x17   : > { %s53_s9 = ssub.s32 %s2030_s30, %s51_s6  ;;  %p132_p10 = scmp.eq.s32.totalorder %s2706_s25, 5 }
  0x18   : > { %s54_s10 = sor.u32 %s53_s9, %s52_s7  ;;  %p137_p12 = scmp.ne.s32.totalorder %s1871_s16, %s1867_s15 }
  0x19   : > { %p55_p9 = scmp.eq.s32.totalorder %s54_s10, 0  ;;  %p2055_p11 = por %p132_p10, %p131_p8 }
  0x1a   : > { %s2050_s11 = scalar_select %p119_p7, %s1875_s17, %s121_s5  }
  0x1b   : > { %s2053_s12 = scalar_select %p55_p9, %s1883_s19, %s57_s29  }
  0x1c   : > { %p138_p13 = scmp.eq.s32.totalorder %s2705_s26, 5  ;;  %p1417_p1 = scmp.ge.s32.totalorder %s1903_s24, 6 }
  0x1e   : > { %p2063_p0 = por %p138_p13, %p137_p12  ;;  %210 = sbr.rel (%p1417_p1) target bundleno = 93 (0x5d), region = 16 }
  0x25   : > { %213 = sbr.rel (!%p2040_p6) target bundleno = 93 (0x5d), region = 20  ;;  %s215_s29 = sand.u32 (%p2040_p6), 1, %s1883_s19  }
  0x26   : > { %s1419_s5 = sshll.u32 (%p2040_p6), %s2030_s30, 2  ;;  %s1418_s6 = sshll.u32 (%p2040_p6), %s215_s29, 7 }
  0x27   : > { %s223_s7 = ssub.s32 (%p2040_p6), 10, %s1419_s5  ;;  %s1495_s9 = smul.u32 (%p2040_p6), 40, %s1899_s23 }
  0x28   : > { %p224_p2 = scmp.lt.s32.totalorder (%p2040_p6), %s223_s7, 4  ;;  %s2724_s0 = sld [smem:[#allocation13_spill]] (%p2040_p6) }
  0x29   : > { %s229_s10 = sadd.s32 (%p2040_p6), %s1495_s9, %s1419_s5  ;;  %s2081_s22 = scalar_lea.vmem (%p2040_p6), [#allocation2], %s1418_s6  }
  0x2a   : > { %s1422_s25 = sshll.u32 (%p2040_p6), %s229_s10, 3 }
  0x2c   : > { %s2762_s7 = smov (!%p224_p2, %s223_s7), 4 }
  0x2d   : > { %s1420_s26 = sshll.u32 %s2762_s7, 9 }
  0x2e   : > { %s2079_s8 = scalar_lea.vmem %s2724_s0, %s1422_s25   ;;  %p1423_p3 = scmp.eq.s32.totalorder %s1420_s26, 0 }
  0x2f   : > { %s2084_s30 = sshrl.u32 (!%p1423_p3), %s2762_s7, 2 }
  0x30   : > { %234 = sbr.rel (%p1423_p3) target bundleno = 93 (0x5d), region = 24  ;;  %p1424_p4 = scmp.le.s32.totalorder (!%p1423_p3), %s2084_s30, 0 }
  0x37   : > { %1332 = sbr.rel (%p1424_p4) target bundleno = 72 (0x48), region = 169  ;;  %s2725_s29 = smov (!%p1424_p4), %s2081_s22 }
  0x38   : > { %s2726_s5 = smov (!%p1424_p4), %s2079_s8  ;;  %s2093_s9 = smov (!%p1424_p4), 0  }
  0x39   : > { %s2095_s25 = smov (!%p1424_p4), 0  }
  0x3e LB: >> { %v332_v0 = vld [vmem:[%s1911_s5] sm:$0xff]  ;;  %v334_v1 = vld [vmem:[%s1911_s5 + $0x8] sm:$0xff]  ;;  %v336_v2 = vld [vmem:[%s1911_s5 + $0x10] sm:$0xff]  ;;  %s364_s26 = sadd.s32 1, %s1915_s9  ;;  %s326_s25 = sadd.s32 1, %s1919_s25   ;;  %s1919_s25 = sphi %s2095_s25, %s326_s25   ;;  %s1915_s9 = sphi %s2093_s9, %s2727_s9   ;;  %s1911_s5 = sphi %s2726_s5, %s369_s5   ;;  %s1907_s29 = sphi %s2725_s29, %s370_s29  }
  0x3f   : >> { %333 = vst [vmem:[%s1907_s29] sm:$0xff] %v332_v0  ;;  %335 = vst [vmem:[%s1907_s29 + $0x8] sm:$0xff] %v334_v1  ;;  %v338_v3 = vld [vmem:[%s1911_s5 + $0x18] sm:$0xff]  ;;  %v340_v4 = vld [vmem:[%s1911_s5 + $0x50] sm:$0xff]  ;;  %p365_p5 = scmp.ge.s32.totalorder %s364_s26, %s2084_s30  ;;  %p325_p6 = scmp.ge.s32.totalorder %s326_s25, %s2084_s30 }
  0x40   : >> { %337 = vst [vmem:[%s1907_s29 + $0x10] sm:$0xff] %v336_v2  ;;  %v342_v5 = vld [vmem:[%s1911_s5 + $0x58] sm:$0xff]  ;;  %339 = vst [vmem:[%s1907_s29 + $0x18] sm:$0xff] %v338_v3  ;;  %v344_v6 = vld [vmem:[%s1911_s5 + $0x60] sm:$0xff] }
  0x41   : >> { %341 = vst [vmem:[%s1907_s29 + $0x20] sm:$0xff] %v340_v4  ;;  %343 = vst [vmem:[%s1907_s29 + $0x28] sm:$0xff] %v342_v5  ;;  %v346_v7 = vld [vmem:[%s1911_s5 + $0x68] sm:$0xff]  ;;  %v348_v8 = vld [vmem:[%s1911_s5 + $0xa0] sm:$0xff]  ;;  %s2764_s26 = smov (%p365_p5, %s364_s26), 0  ;;  %328 = sbr.rel (!%p325_p6) target bundleno = 62 (0x3e), region = 175 }
  0x42   : >> { %345 = vst [vmem:[%s1907_s29 + $0x30] sm:$0xff] %v344_v6  ;;  %347 = vst [vmem:[%s1907_s29 + $0x38] sm:$0xff] %v346_v7  ;;  %v350_v9 = vld [vmem:[%s1911_s5 + $0xa8] sm:$0xff]  ;;  %v352_v10 = vld [vmem:[%s1911_s5 + $0xb0] sm:$0xff]  ;;  %s1425_s27 = sshll.u32 %s2764_s26, 5  ;;  %s2727_s9 = smov %s2764_s26 }
  0x43   : >> { %349 = vst [vmem:[%s1907_s29 + $0x40] sm:$0xff] %v348_v8  ;;  %v354_v11 = vld [vmem:[%s1911_s5 + $0xb8] sm:$0xff]  ;;  %351 = vst [vmem:[%s1907_s29 + $0x48] sm:$0xff] %v350_v9  ;;  %v356_v12 = vld [vmem:[%s1911_s5 + $0xf0] sm:$0xff] }
  0x44   : >> { %353 = vst [vmem:[%s1907_s29 + $0x50] sm:$0xff] %v352_v10  ;;  %355 = vst [vmem:[%s1907_s29 + $0x58] sm:$0xff] %v354_v11  ;;  %v358_v13 = vld [vmem:[%s1911_s5 + $0xf8] sm:$0xff]  ;;  %v360_v14 = vld [vmem:[%s1911_s5 + $0x100] sm:$0xff] }
  0x45   : >> { %357 = vst [vmem:[%s1907_s29 + $0x60] sm:$0xff] %v356_v12  ;;  %359 = vst [vmem:[%s1907_s29 + $0x68] sm:$0xff] %v358_v13  ;;  %v362_v15 = vld [vmem:[%s1911_s5 + $0x108] sm:$0xff]  ;;  %s369_s5 = scalar_lea.vmem %s2079_s8, %s1425_s27  }
  0x46   : >> { %361 = vst [vmem:[%s1907_s29 + $0x70] sm:$0xff] %v360_v14  ;;  %363 = vst [vmem:[%s1907_s29 + $0x78] sm:$0xff] %v362_v15  ;;  %s370_s29 = scalar_lea.vmem %s2081_s22, %s1425_s27 [#allocation2]  }
  0x48 PF: > { %s2153_s28 = sand.u32 3, %s2762_s7   ;;  %s1484_s6 = sshll.u32 %s2084_s30, 5 }
  0x49   : > { %s2157_s10 = scalar_lea.vmem %s2079_s8, %s1484_s6   ;;  %s2160_s27 = scalar_lea.vmem %s2081_s22, %s1484_s6 [#allocation2]  }
  0x4a   : > { %p1430_p7 = scmp.le.s32.totalorder %s2153_s28, 0 }
  0x4b   : > { %s2728_s25 = smov (!%p1430_p7), %s2160_s27  ;;  %s2729_s29 = smov (!%p1430_p7), %s2157_s10 }
  0x4c   : > { %1346 = sbr.rel (%p1430_p7) target bundleno = 93 (0x5d), region = 180  ;;  %s1929_s5 = smov (!%p1430_p7), 0  }
  0x4d   : > { %s1933_s9 = smov (!%p1430_p7), 0  }
  0x53 LB: >> { %v387_v16 = vld [vmem:[%s1927_s29] sm:$0xff]  ;;  %v389_v17 = vld [vmem:[%s1927_s29 + $0x50] sm:$0xff]  ;;  %s395_s22 = sadd.s32 1, %s1931_s5  ;;  %s381_s9 = sadd.s32 1, %s1935_s9   ;;  %s1935_s9 = sphi %s1933_s9, %s381_s9   ;;  %s1931_s5 = sphi %s1929_s5, %s1930_s5   ;;  %s1927_s29 = sphi %s2729_s29, %s400_s29   ;;  %s1923_s25 = sphi %s2728_s25, %s401_s25  }
  0x54   : >> { %v391_v18 = vld [vmem:[%s1927_s29 + $0xa0] sm:$0xff]  ;;  %388 = vst [vmem:[%s1923_s25] sm:$0xff] %v387_v16  ;;  %390 = vst [vmem:[%s1923_s25 + $0x20] sm:$0xff] %v389_v17  ;;  %v393_v19 = vld [vmem:[%s1927_s29 + $0xf0] sm:$0xff]  ;;  %p396_p8 = scmp.ge.s32.totalorder %s395_s22, %s2153_s28  ;;  %p380_p9 = scmp.ge.s32.totalorder %s381_s9, %s2153_s28 }
  0x55   : >> { %392 = vst [vmem:[%s1923_s25 + $0x40] sm:$0xff] %v391_v18  ;;  %394 = vst [vmem:[%s1923_s25 + $0x60] sm:$0xff] %v393_v19 }
  0x56   : >> { %s2766_s22 = smov (%p396_p8, %s395_s22), 0  ;;  %383 = sbr.rel (!%p380_p9) target bundleno = 83 (0x53), region = 186 }
  0x57   : >> { %s1431_s7 = sshll.u32 %s2766_s22, 3  ;;  %s1930_s5 = smov %s2766_s22  }
  0x58   : >> { %s400_s29 = scalar_lea.vmem %s2157_s10, %s1431_s7   ;;  %s401_s25 = scalar_lea.vmem %s2160_s27, %s1431_s7 [#allocation2]  }
  0x5d PF: > { %p1433_p10 = scmp.ge.s32.totalorder %s1903_s24, 1  ;;  %p435_p12 = scmp.lt.s32.totalorder %s1903_s24, 7 }
  0x5f   : > { %p436_p13 = pnand %p1433_p10, %p435_p12 }
  0x60   : > { %s442_s8 = sand.u32 (!%p436_p13), 1, %s1879_s18   ;;  %s2710_s30 = sand.u32 (!%p436_p13), 1, %s1871_s16  }
  0x61   : > { %439 = sbr.rel (%p436_p13) target bundleno = 372 (0x174), region = 76  ;;  %s1434_s26 = sshll.u32 (!%p436_p13), %s442_s8, 7 }
  0x62   : > { %s1435_s28 = sshll.u32 (!%p436_p13), %s2710_s30, 2  ;;  %p505_p1 = scmp.lt.s32.totalorder (!%p436_p13), %s1887_s20, 2 }
  0x63   : > { %p512_p2 = scmp.lt.s32.totalorder (!%p436_p13), %s1891_s21, 1  ;;  %s2194_s18 = scalar_lea.vmem (!%p436_p13), [#allocation2], %s1434_s26 }
  0x64   : > { %s2196_s8 = scalar_lea.vmem (!%p436_p13), [#allocation3], %s1435_s28  ;;  %s2198_s30 = scalar_lea.vmem (!%p436_p13), [#allocation5], %s1435_s28 }
  0x65   : > { %s2200_s0 = scalar_lea.vmem (!%p436_p13), [#allocation7], %s1435_s28  ;;  %p1440_p4 = scmp.ne.s32.totalorder (!%p436_p13), %s1887_s20, 0 }
  0x68   : > { %s506_s6 = scalar_select %p505_p1, %s1887_s20, 2 }
  0x69   : > { %s513_s10 = scalar_select %p512_p2, %s1891_s21, 1 }
  0x6a   : > { %s1438_s27 = sshll.u32 %s506_s6, 2  ;;  %532 = sbr.rel (%p1440_p4) target bundleno = 113 (0x71), region = 84  ;;  %v1937_v20 = vmov (!%p1440_p4), 0.0  }
  0x6b   : > { %p514_p3 = scmp.lt.s32.totalorder %s1438_s27, 9  ;;  %s1496_s25 = smul.u32 10, %s513_s10  ;;  %533 = vst [vmem:[%s2196_s8] sm:$0xf] (!%p1440_p4), %v1937_v20  ;;  %534 = vst [vmem:[%s2198_s30] sm:$0xf] (!%p1440_p4), %v1937_v20 }
  0x6c   : > { %535 = vst [vmem:[%s2200_s0] sm:$0xf] (!%p1440_p4), %v1937_v20 }
  0x6d   : > { %s2768_s27 = smov (!%p514_p3, %s1438_s27), 9 }
  0x6e   : > { %s517_s29 = sadd.s32 %s1496_s25, %s2768_s27 }
  0x6f   : > { %s1439_s5 = sshll.u32 %s517_s29, 1 }
  0x70   : > { %s2192_s7 = scalar_lea.vmem %s2701_s1, %s1439_s5 }
  0x71 PF: > { %v536_v21 = vld [vmem:[%s2194_s18] sm:$0xff]  ;;  %v537_v22 = vld [vmem:[%s2194_s18 + $0x8] sm:$0xff]  ;;  %v538_v23 = vld [vmem:[%s2194_s18 + $0x10] sm:$0xff]  ;;  %s1441_s26 = sshll.u32 %s1887_s20, 5 }
  0x72   : > { %v539_v24 = vld [vmem:[%s2194_s18 + $0x18] sm:$0xff]  ;;  %v540_v25 = vld [vmem:[%s2194_s18 + $0x20] sm:$0xff]  ;;  %v541_v26 = vld [vmem:[%s2194_s18 + $0x28] sm:$0xff]  ;;  %s2215_s28 = sadd.s32 32, %s1441_s26 }
  0x73   : > { %v542_v27 = vld [vmem:[%s2194_s18 + $0x30] sm:$0xff]  ;;  %v543_v28 = vld [vmem:[%s2194_s18 + $0x38] sm:$0xff]  ;;  %v544_v29 = vld [vmem:[%s2194_s18 + $0x40] sm:$0xff]  ;;  %v560_v30 = vmax.f32 %v536_v21, %v540_v25  ;;  %v563_v31 = vmax.f32 %v537_v22, %v541_v26  ;;  %p1442_p5 = scmp.gt.s32.totalorder %s2215_s28, 78 }
  0x74   : > { %v545_v32 = vld [vmem:[%s2194_s18 + $0x48] sm:$0xff]  ;;  %v546_v33 = vld [vmem:[%s2194_s18 + $0x50] sm:$0xff]  ;;  %v547_v34 = vld [vmem:[%s2194_s18 + $0x58] sm:$0xff]  ;;  %v566_v35 = vmax.f32 %v538_v23, %v542_v27  ;;  %v569_v36 = vmax.f32 %v539_v24, %v543_v28 }
  0x75   : > { %v548_v37 = vld [vmem:[%s2194_s18 + $0x60] sm:$0xff]  ;;  %v549_v38 = vld [vmem:[%s2194_s18 + $0x68] sm:$0xff]  ;;  %v550_v39 = vld [vmem:[%s2194_s18 + $0x70] sm:$0xff]  ;;  %v561_v40 = vmax.f32 %v560_v30, %v544_v29  ;;  %v564_v41 = vmax.f32 %v563_v31, %v545_v32 }
  0x76   : > { %v551_v42 = vld [vmem:[%s2194_s18 + $0x78] sm:$0xff]  ;;  %v1487_v43 = vld [vmem:[%s2192_s7] sm:$0xff]   ;;  %v567_v44 = vmax.f32 %v566_v35, %v546_v33  ;;  %v570_v45 = vmax.f32 %v569_v36, %v547_v34 }
  0x77   : > { %v2228_v46 = vunpack.c.0.s8 %v1487_v43  ;;  %v2230_v47 = vunpack.c.1.s8 %v1487_v43  ;;  %v2232_v48 = vunpack.c.2.s8 %v1487_v43  ;;  %v2234_v49 = vunpack.c.3.s8 %v1487_v43 }
  0x78   : > { %v562_v50 = vmax.f32 %v561_v40, %v548_v37  ;;  %v565_v51 = vmax.f32 %v564_v41, %v549_v38  ;;  %v568_v52 = vmax.f32 %v567_v44, %v550_v39  ;;  %v571_v53 = vmax.f32 %v570_v45, %v551_v42 }
  0x79   : > { %vm672_vm0 = vcmp.eq.s32.totalorder (!%p1442_p5), %v2228_v46, 0  ;;  %vm673_vm1 = vcmp.eq.s32.totalorder (!%p1442_p5), %v2230_v47, 0  ;;  %vm674_vm2 = vcmp.eq.s32.totalorder (!%p1442_p5), %v2232_v48, 0  ;;  %vm675_vm3 = vcmp.eq.s32.totalorder (!%p1442_p5), %v2234_v49, 0 }
  0x7a   : > { %v572_v54 = vsub.f32 %v536_v21, %v562_v50  ;;  %v573_v55 = vsub.f32 %v537_v22, %v565_v51  ;;  %v574_v56 = vsub.f32 %v538_v23, %v568_v52  ;;  %v575_v57 = vsub.f32 %v539_v24, %v571_v53 }
  0x7b   : > { %v576_v58 = vsub.f32 %v540_v25, %v562_v50  ;;  %v577_v59 = vsub.f32 %v541_v26, %v565_v51  ;;  %v578_v60 = vsub.f32 %v542_v27, %v568_v52  ;;  %v579_v0 = vsub.f32 %v543_v28, %v571_v53 }
  0x7c   : > { %v588_v61 = vmul.f32 1.442695, %v572_v54  ;;  %v590_v62 = vmul.f32 1.442695, %v573_v55  ;;  %v592_v63 = vmul.f32 1.442695, %v574_v56  ;;  %v580_v2 = vsub.f32 %v544_v29, %v562_v50 }
  0x7d   : > { %v594_v1 = vmul.f32 1.442695, %v575_v57  ;;  %v596_v3 = vmul.f32 1.442695, %v576_v58  ;;  %v581_v4 = vsub.f32 %v545_v32, %v565_v51  ;;  %v598_v5 = vmul.f32 1.442695, %v577_v59 }
  0x7e   : > { %1661 = vpow2.f32 %v588_v61  ;;  %v582_v6 = vsub.f32 %v546_v33, %v568_v52  ;;  %v600_v7 = vmul.f32 1.442695, %v578_v60  ;;  %v583_v8 = vsub.f32 %v547_v34, %v571_v53 }
  0x7f   : > { %1663 = vpow2.f32 %v590_v62  ;;  %v602_v9 = vmul.f32 1.442695, %v579_v0  ;;  %v584_v10 = vsub.f32 %v548_v37, %v562_v50  ;;  %v604_v11 = vmul.f32 1.442695, %v580_v2 }
  0x80   : > { %1665 = vpow2.f32 %v592_v63  ;;  %v585_v12 = vsub.f32 %v549_v38, %v565_v51  ;;  %v606_v13 = vmul.f32 1.442695, %v581_v4  ;;  %v586_v14 = vsub.f32 %v550_v39, %v568_v52 }
  0x81   : > { %1667 = vpow2.f32 %v594_v1  ;;  %v608_v15 = vmul.f32 1.442695, %v582_v6  ;;  %v587_v16 = vsub.f32 %v551_v42, %v571_v53  ;;  %v610_v17 = vmul.f32 1.442695, %v583_v8 }
  0x82   : > { %1669 = vpow2.f32 %v596_v3  ;;  %v612_v18 = vmul.f32 1.442695, %v584_v10  ;;  %v614_v19 = vmul.f32 1.442695, %v585_v12  ;;  %v616_v21 = vmul.f32 1.442695, %v586_v14 }
  0x83   : > { %1671 = vpow2.f32 %v598_v5  ;;  %v618_v23 = vmul.f32 1.442695, %v587_v16  ;;  %vm676_vm4 = vcmp.eq.s32.totalorder (!%p1442_p5), %v2228_v46, 1  ;;  %vm677_vm5 = vcmp.eq.s32.totalorder (!%p1442_p5), %v2230_v47, 1 }
  0x84   : > { %1673 = vpow2.f32 %v600_v7  ;;  %vm678_vm6 = vcmp.eq.s32.totalorder (!%p1442_p5), %v2232_v48, 1  ;;  %vm2713_vm7 = vcmp.eq.s32.totalorder (!%p1442_p5), %v2234_v49, 1  ;;  %vm680_vm8 = vcmp.eq.s32.totalorder (!%p1442_p5), %v2228_v46, 2 }
  0x85   : > { %1675 = vpow2.f32 %v602_v9  ;;  %vm681_vm9 = vcmp.eq.s32.totalorder (!%p1442_p5), %v2230_v47, 2  ;;  %vm682_vm10 = vcmp.eq.s32.totalorder (!%p1442_p5), %v2232_v48, 2  ;;  %vm2712_vm11 = vcmp.eq.s32.totalorder (!%p1442_p5), %v2234_v49, 2 }
  0x86   : > { %1677 = vpow2.f32 %v604_v11  ;;  %vm684_vm12 = vcmp.eq.s32.totalorder (!%p1442_p5), %v2228_v46, 3  ;;  %vm685_vm13 = vcmp.eq.s32.totalorder (!%p1442_p5), %v2230_v47, 3  ;;  %vm686_vm14 = vcmp.eq.s32.totalorder (!%p1442_p5), %v2232_v48, 3 }
  0x87   : > { %1679 = vpow2.f32 %v606_v13  ;;  %vm2711_vm15 = vcmp.eq.s32.totalorder (!%p1442_p5), %v2234_v49, 3 }
  0x88   : > { %v1662_v20 = vpop.eup %1661  ;;  %1681 = vpow2.f32 %v608_v15 }
  0x89   : > { %v1664_v22 = vpop.eup %1663  ;;  %1683 = vpow2.f32 %v610_v17 }
  0x8a   : > { %v1666_v24 = vpop.eup %1665  ;;  %1685 = vpow2.f32 %v612_v18 }
  0x8b   : > { %v1668_v25 = vpop.eup %1667  ;;  %1687 = vpow2.f32 %v614_v19 }
  0x8c   : > { %v1670_v26 = vpop.eup %1669  ;;  %1689 = vpow2.f32 %v616_v21 }
  0x8d   : > { %v1672_v27 = vpop.eup %1671  ;;  %1691 = vpow2.f32 %v618_v23  ;;  %v620_v28 = vadd.f32 %v1670_v26, %v1662_v20 }
  0x8e   : > { %v1674_v29 = vpop.eup %1673  ;;  %v623_v30 = vadd.f32 %v1672_v27, %v1664_v22 }
  0x8f   : > { %v1676_v31 = vpop.eup %1675  ;;  %v626_v32 = vadd.f32 %v1674_v29, %v1666_v24 }
  0x90   : > { %v1678_v33 = vpop.eup %1677  ;;  %v629_v34 = vadd.f32 %v1676_v31, %v1668_v25 }
  0x91   : > { %v1680_v35 = vpop.eup %1679  ;;  %v621_v36 = vadd.f32 %v1678_v33, %v620_v28 }
  0x92   : > { %v1682_v37 = vpop.eup %1681  ;;  %v624_v38 = vadd.f32 %v1680_v35, %v623_v30 }
  0x93   : > { %v1684_v39 = vpop.eup %1683  ;;  %v627_v40 = vadd.f32 %v1682_v37, %v626_v32 }
  0x94   : > { %v1686_v41 = vpop.eup %1685  ;;  %v630_v42 = vadd.f32 %v1684_v39, %v629_v34 }
  0x95   : > { %v1688_v43 = vpop.eup %1687  ;;  %v622_v44 = vadd.f32 %v1686_v41, %v621_v36 }
  0x96   : > { %v1690_v45 = vpop.eup %1689  ;;  %v625_v50 = vadd.f32 %v1688_v43, %v624_v38 }
  0x97   : > { %v1692_v51 = vpop.eup %1691  ;;  %v628_v52 = vadd.f32 %v1690_v45, %v627_v40  ;;  %1693 = vrcp.f32 %v622_v44 }
  0x98   : > { %v631_v53 = vadd.f32 %v1692_v51, %v630_v42  ;;  %1695 = vrcp.f32 %v625_v50 }
  0x99   : > { %1697 = vrcp.f32 %v628_v52 }
  0x9a   : > { %1699 = vrcp.f32 %v631_v53 }
  0xa1   : > { %v1694_v54 = vpop.eup %1693 }
  0xa2   : > { %v1696_v55 = vpop.eup %1695  ;;  %v636_v56 = vmul.f32 %v1694_v54, %v622_v44 }
  0xa3   : > { %v1698_v57 = vpop.eup %1697  ;;  %v637_v58 = vmul.f32 %v1696_v55, %v625_v50 }
  0xa4   : > { %v1700_v59 = vpop.eup %1699  ;;  %v638_v60 = vmul.f32 %v1698_v57, %v628_v52  ;;  %v640_v61 = vsub.f32 2.0, %v636_v56 }
  0xa5   : > { %v639_v62 = vmul.f32 %v1700_v59, %v631_v53  ;;  %v641_v63 = vsub.f32 2.0, %v637_v58 }
  0xa6   : > { %v642_v0 = vsub.f32 2.0, %v638_v60  ;;  %v644_v1 = vmul.f32 %v1694_v54, %v640_v61  ;;  %671 = sbr.rel (%p1442_p5) target bundleno = 225 (0xe1), region = 88 }
  0xa7   : > { %v643_v2 = vsub.f32 2.0, %v639_v62  ;;  %v645_v3 = vmul.f32 %v1696_v55, %v641_v63 }
  0xa8   : > { %v646_v4 = vmul.f32 %v1698_v57, %v642_v0  ;;  %v2236_v5 = vmul.f32 %v1662_v20, %v644_v1  ;;  %v2238_v6 = vmul.f32 %v1670_v26, %v644_v1  ;;  %v2240_v7 = vmul.f32 %v1678_v33, %v644_v1 }
  0xa9   : > { %v647_v8 = vmul.f32 %v1700_v59, %v643_v2  ;;  %v2242_v9 = vmul.f32 %v1664_v22, %v645_v3  ;;  %v2244_v10 = vmul.f32 %v1672_v27, %v645_v3  ;;  %v2246_v11 = vmul.f32 %v1680_v35, %v645_v3 }
  0xaa   : > { %v2248_v12 = vmul.f32 %v1666_v24, %v646_v4  ;;  %v2250_v13 = vmul.f32 %v1674_v29, %v646_v4  ;;  %v2252_v14 = vmul.f32 %v1682_v37, %v646_v4  ;;  %v2254_v15 = vmul.f32 %v1686_v41, %v644_v1 }
  0xab   : > { %v2256_v16 = vmul.f32 %v1668_v25, %v647_v8  ;;  %v2258_v17 = vmul.f32 %v1676_v31, %v647_v8  ;;  %v2260_v18 = vmul.f32 %v1684_v39, %v647_v8  ;;  %v2262_v19 = vmul.f32 %v1688_v43, %v645_v3 }
  0xac   : > { %v2264_v20 = vmul.f32 %v1690_v45, %v646_v4  ;;  %v2266_v21 = vmul.f32 %v1692_v51, %v647_v8  ;;  %v689_v22 = vsel (!%p1442_p5), %vm672_vm0, %v2236_v5, 0.0  ;;  %v690_v23 = vsel (!%p1442_p5), %vm673_vm1, %v2242_v9, 0.0 }
  0xad   : > { %v691_v24 = vsel %vm674_vm2, %v2248_v12, 0.0  ;;  %v693_v25 = vsel %vm676_vm4, %v2238_v6, 0.0  ;;  %v694_v26 = vsel %vm677_vm5, %v2244_v10, 0.0  ;;  %v692_v27 = vsel %vm675_vm3, %v2256_v16, 0.0 }
  0xae   : > { %v695_v28 = vsel %vm678_vm6, %v2250_v13, 0.0  ;;  %v697_v29 = vsel %vm680_vm8, %v2240_v7, 0.0  ;;  %v698_v30 = vsel %vm681_vm9, %v2246_v11, 0.0  ;;  %v699_v31 = vsel %vm682_vm10, %v2252_v14, 0.0 }
  0xaf   : > { %v701_v32 = vsel %vm684_vm12, %v2254_v15, 0.0  ;;  %v702_v33 = vsel %vm685_vm13, %v2262_v19, 0.0  ;;  %v703_v34 = vsel %vm686_vm14, %v2264_v20, 0.0  ;;  %v705_v35 = vadd.f32 %v690_v23, %v689_v22 }
  0xb0   : > { %v714_v36 = vadd.f32 %v694_v26, %v693_v25  ;;  %v723_v37 = vadd.f32 %v698_v30, %v697_v29  ;;  %v732_v38 = vadd.f32 %v702_v33, %v701_v32  ;;  %v696_v39 = vsel %vm2713_vm7, %v2258_v17, 0.0 }
  0xb1   : > { %v700_v40 = vsel %vm2712_vm11, %v2260_v18, 0.0  ;;  %v704_v41 = vsel %vm2711_vm15, %v2266_v21, 0.0  ;;  %v755_v42 = vadd.f32 %v2242_v9, %v2236_v5  ;;  %v706_v43 = vadd.f32 %v705_v35, %v691_v24 }
  0xb2   : > { %v715_v44 = vadd.f32 %v714_v36, %v695_v28  ;;  %v724_v45 = vadd.f32 %v723_v37, %v699_v31  ;;  %v733_v50 = vadd.f32 %v732_v38, %v703_v34  ;;  %v764_v52 = vadd.f32 %v2244_v10, %v2238_v6 }
  0xb3   : > { %v756_v51 = vadd.f32 %v755_v42, %v2248_v12  ;;  %v773_v53 = vadd.f32 %v2246_v11, %v2240_v7  ;;  %v782_v54 = vadd.f32 %v2262_v19, %v2254_v15  ;;  %v707_v55 = vadd.f32 %v706_v43, %v692_v27 }
  0xb4   : > { %v716_v56 = vadd.f32 %v715_v44, %v696_v39  ;;  %v725_v57 = vadd.f32 %v724_v45, %v700_v40  ;;  %v734_v58 = vadd.f32 %v733_v50, %v704_v41  ;;  %v765_v60 = vadd.f32 %v764_v52, %v2250_v13 }
  0xb5   : > { %v757_v59 = vadd.f32 %v756_v51, %v2256_v16  ;;  %v774_v61 = vadd.f32 %v773_v53, %v2252_v14  ;;  %v783_v62 = vadd.f32 %v782_v54, %v2264_v20  ;;  %v708_v63 = vrot.slane %v707_v55, 4 }
  0xb6   : > { %v717_v0 = vrot.slane %v716_v56, 4  ;;  %v726_v1 = vrot.slane %v725_v57, 4  ;;  %v735_v2 = vrot.slane %v734_v58, 4  ;;  %vm745_vm15 = vcmask 1041409  }
  0xb7   : > { %v758_v3 = vrot.slane %v757_v59, 4  ;;  %v766_v4 = vadd.f32 %v765_v60, %v2258_v17  ;;  %v775_v8 = vadd.f32 %v774_v61, %v2260_v18  ;;  %v784_v22 = vadd.f32 %v783_v62, %v2266_v21 }
  0xb8   : > { %v709_v23 = vadd.f32 %v708_v63, %v707_v55  ;;  %v718_v24 = vadd.f32 %v717_v0, %v716_v56  ;;  %v727_v25 = vadd.f32 %v726_v1, %v725_v57  ;;  %v736_v26 = vadd.f32 %v735_v2, %v734_v58 }
  0xb9   : > { %vm747_vm11 = vcmask 1042434   ;;  %vm749_vm7 = vcmask 1043459   ;;  %v759_v27 = vadd.f32 %v758_v3, %v757_v59  ;;  %v767_v28 = vrot.slane %v766_v4, 4  ;;  %v688_v3 = vld [vmem:[%s2196_s8] sm:$0xf] }
  0xba   : > { %v776_v29 = vrot.slane %v775_v8, 4  ;;  %v785_v30 = vrot.slane %v784_v22, 4  ;;  %v710_v31 = vrot.slane %v709_v23, 2  ;;  %v719_v32 = vrot.slane %v718_v24, 2 }
  0xbb   : > { %v728_v33 = vrot.slane %v727_v25, 2  ;;  %v737_v34 = vrot.slane %v736_v26, 2  ;;  %v760_v35 = vrot.slane %v759_v27, 2  ;;  %v768_v36 = vadd.f32 %v767_v28, %v766_v4 }
  0xbc   : > { %v777_v37 = vadd.f32 %v776_v29, %v775_v8  ;;  %v786_v38 = vadd.f32 %v785_v30, %v784_v22  ;;  %v711_v39 = vadd.f32 %v710_v31, %v709_v23  ;;  %v720_v40 = vadd.f32 %v719_v32, %v718_v24 }
  0xbd   : > { %v729_v41 = vadd.f32 %v728_v33, %v727_v25  ;;  %v738_v42 = vadd.f32 %v737_v34, %v736_v26  ;;  %v761_v43 = vadd.f32 %v760_v35, %v759_v27  ;;  %v769_v44 = vrot.slane %v768_v36, 2  ;;  %v754_v27 = vld [vmem:[%s2198_s30] sm:$0xf] }
  0xbe   : > { %v778_v45 = vrot.slane %v777_v37, 2  ;;  %v787_v50 = vrot.slane %v786_v38, 2  ;;  %v712_v51 = vrot.slane %v711_v39, 1  ;;  %v721_v52 = vrot.slane %v720_v40, 1 }
  0xbf   : > { %v730_v53 = vrot.slane %v729_v41, 1  ;;  %v739_v54 = vrot.slane %v738_v42, 1  ;;  %v762_v55 = vrot.slane %v761_v43, 1  ;;  %v770_v56 = vadd.f32 %v769_v44, %v768_v36 }
  0xc0   : > { %v779_v57 = vadd.f32 %v778_v45, %v777_v37  ;;  %v788_v58 = vadd.f32 %v787_v50, %v786_v38  ;;  %v713_v59 = vadd.f32 %v712_v51, %v711_v39  ;;  %v722_v60 = vadd.f32 %v721_v52, %v720_v40 }
  0xc1   : > { %v731_v61 = vadd.f32 %v730_v53, %v729_v41  ;;  %v740_v62 = vadd.f32 %v739_v54, %v738_v42  ;;  %v763_v63 = vadd.f32 %v762_v55, %v761_v43  ;;  %v771_v0 = vrot.slane %v770_v56, 1 }
  0xc2   : > { %v780_v1 = vrot.slane %v779_v57, 1  ;;  %v789_v2 = vrot.slane %v788_v58, 1  ;;  %v746_v4 = vsel %vm745_vm15, %v722_v60, %v713_v59  ;;  %v1938_v29 = vmov 0.0  }
  0xc3   : > { %v748_v8 = vsel %vm747_vm11, %v731_v61, %v746_v4  ;;  %v772_v22 = vadd.f32 %v771_v0, %v770_v56  ;;  %v1443_v30 = vsel %vm672_vm0, 1.0, %v1938_v29  ;;  %v1444_v32 = vsel %vm673_vm1, 1.0, %v1938_v29 }
  0xc4   : > { %v781_v23 = vadd.f32 %v780_v1, %v779_v57  ;;  %v790_v24 = vadd.f32 %v789_v2, %v788_v58  ;;  %v750_v25 = vsel %vm749_vm7, %v740_v62, %v748_v8  ;;  %v1447_v33 = vsel %vm676_vm4, 1.0, %v1938_v29 }
  0xc5   : > { %v752_v26 = vadd.f32 %v750_v25, %v688_v3  ;;  %v795_v28 = vsel %vm745_vm15, %v772_v22, %v763_v63  ;;  %v1448_v34 = vsel %vm677_vm5, 1.0, %v1938_v29  ;;  %v1445_v36 = vsel %vm674_vm2, 1.0, %v1938_v29 }
  0xc6   : > { %v796_v31 = vsel %vm747_vm11, %v781_v23, %v795_v28  ;;  %v1451_v37 = vsel %vm680_vm8, 1.0, %v1938_v29  ;;  %v1452_v38 = vsel %vm681_vm9, 1.0, %v1938_v29  ;;  %v1449_v40 = vsel %vm678_vm6, 1.0, %v1938_v29 }
  0xc7   : > { %753 = vst [vmem:[%s2196_s8] sm:$0xf] %v752_v26  ;;  %v797_v35 = vsel %vm749_vm7, %v790_v24, %v796_v31  ;;  %v1455_v41 = vsel %vm684_vm12, 1.0, %v1938_v29  ;;  %v1456_v42 = vsel %vm685_vm13, 1.0, %v1938_v29  ;;  %v1453_v43 = vsel %vm682_vm10, 1.0, %v1938_v29 }
  0xc8   : > { %v799_v39 = vadd.f32 %v797_v35, %v754_v27  ;;  %v1457_v44 = vsel %vm686_vm14, 1.0, %v1938_v29  ;;  %v834_v45 = vadd.f32 %v1444_v32, %v1443_v30  ;;  %v843_v50 = vadd.f32 %v1448_v34, %v1447_v33 }
  0xc9   : > { %v1446_v51 = vsel %vm675_vm3, 1.0, %v1938_v29  ;;  %vm2730_vm0 = vcmp.eq.s32.totalorder %v2234_v49, 1  ;;  %v852_v53 = vadd.f32 %v1452_v38, %v1451_v37  ;;  %v861_v54 = vadd.f32 %v1456_v42, %v1455_v41  ;;  %v801_v41 = vld [vmem:[%s2200_s0] sm:$0xf] }
  0xca   : > { %800 = vst [vmem:[%s2198_s30] sm:$0xf] %v799_v39  ;;  %v1450_v52 = vsel %vm2730_vm0, 1.0, %v1938_v29  ;;  %vm2731_vm1 = vcmp.eq.s32.totalorder %v2234_v49, 2  ;;  %vm2732_vm2 = vcmp.eq.s32.totalorder %v2234_v49, 3  ;;  %v835_v57 = vadd.f32 %v1445_v36, %v834_v45 }
  0xcb   : > { %v1454_v55 = vsel %vm2731_vm1, 1.0, %v1938_v29  ;;  %v1458_v56 = vsel %vm2732_vm2, 1.0, %v1938_v29  ;;  %v844_v58 = vadd.f32 %v1449_v40, %v843_v50  ;;  %v853_v59 = vadd.f32 %v1453_v43, %v852_v53 }
  0xcc   : > { %v862_v60 = vadd.f32 %v1457_v44, %v861_v54  ;;  %v836_v61 = vadd.f32 %v1446_v51, %v835_v57 }
  0xcd   : > { %v845_v62 = vadd.f32 %v1450_v52, %v844_v58  ;;  %v854_v63 = vadd.f32 %v1454_v55, %v853_v59 }
  0xce   : > { %v863_v0 = vadd.f32 %v1458_v56, %v862_v60  ;;  %v837_v1 = vrot.slane %v836_v61, 4 }
  0xcf   : > { %v846_v2 = vrot.slane %v845_v62, 4  ;;  %v855_v3 = vrot.slane %v854_v63, 4 }
  0xd0   : > { %v864_v4 = vrot.slane %v863_v0, 4  ;;  %v838_v8 = vadd.f32 %v837_v1, %v836_v61 }
  0xd1   : > { %v847_v22 = vadd.f32 %v846_v2, %v845_v62  ;;  %v856_v23 = vadd.f32 %v855_v3, %v854_v63 }
  0xd2   : > { %v865_v24 = vadd.f32 %v864_v4, %v863_v0  ;;  %v839_v25 = vrot.slane %v838_v8, 2 }
  0xd3   : > { %v848_v26 = vrot.slane %v847_v22, 2  ;;  %v857_v27 = vrot.slane %v856_v23, 2 }
  0xd4   : > { %v866_v28 = vrot.slane %v865_v24, 2  ;;  %v840_v29 = vadd.f32 %v839_v25, %v838_v8 }
  0xd5   : > { %v849_v30 = vadd.f32 %v848_v26, %v847_v22  ;;  %v858_v31 = vadd.f32 %v857_v27, %v856_v23 }
  0xd6   : > { %v867_v32 = vadd.f32 %v866_v28, %v865_v24  ;;  %v841_v33 = vrot.slane %v840_v29, 1 }
  0xd7   : > { %v850_v34 = vrot.slane %v849_v30, 1  ;;  %v859_v35 = vrot.slane %v858_v31, 1 }
  0xd8   : > { %v868_v36 = vrot.slane %v867_v32, 1  ;;  %v842_v37 = vadd.f32 %v841_v33, %v840_v29 }
  0xd9   : > { %v851_v38 = vadd.f32 %v850_v34, %v849_v30  ;;  %v860_v39 = vadd.f32 %v859_v35, %v858_v31 }
  0xda   : > { %v869_v40 = vadd.f32 %v868_v36, %v867_v32 }
  0xdb   : > { %v874_v42 = vsel %vm745_vm15, %v851_v38, %v842_v37 }
  0xdc   : > { %v875_v43 = vsel %vm747_vm11, %v860_v39, %v874_v42 }
  0xdd   : > { %v876_v44 = vsel %vm749_vm7, %v869_v40, %v875_v43 }
  0xde   : > { %v878_v45 = vadd.f32 %v876_v44, %v801_v41 }
  0xe0   : > { %879 = vst [vmem:[%s2200_s0] sm:$0xf] %v878_v45 }
  0xe1 PF: > { %p1459_p6 = scmp.le.s32.totalorder %s2215_s28, 78 }
  0xe2   : > { %v884_v50 = vlaneseq (!%p1459_p6)  ;;  %v891_v51 = vstv (!%p1459_p6), %s1441_s26 }
  0xe3   : > { %883 = sbr.rel (%p1459_p6) target bundleno = 299 (0x12b), region = 92 }
  0xe4   : > { %v885_v52 = vshrl.u32 (!%p1459_p6), %v884_v50, 7  ;;  %v890_v53 = vand.u32 (!%p1459_p6), 127, %v884_v50 }
  0xe6   : > { %v886_v54 = vadd.s32 (!%p1459_p6), 8, %v885_v52  ;;  %v887_v55 = vadd.s32 (!%p1459_p6), 16, %v885_v52  ;;  %v888_v56 = vadd.s32 (!%p1459_p6), 24, %v885_v52  ;;  %v892_v57 = vadd.s32 (!%p1459_p6), %v891_v51, %v885_v52 }
  0xe7   : > { %vm904_vm3 = vcmp.lt.s32.totalorder (!%p1459_p6), %v890_v53, 96 }
  0xe8   : > { %v893_v58 = vadd.s32 (!%p1459_p6), %v891_v51, %v886_v54  ;;  %v894_v59 = vadd.s32 (!%p1459_p6), %v891_v51, %v887_v55  ;;  %v895_v60 = vadd.s32 (!%p1459_p6), %v891_v51, %v888_v56  ;;  %vm900_vm4 = vcmp.eq.s32.totalorder (!%p1459_p6), %v892_v57, 78 }
  0xe9   : > { %vm905_vm6 = vmand (!%p1459_p6), %vm900_vm4, %vm904_vm3  ;;  %vm896_vm7 = vcmp.lt.s32.totalorder (!%p1459_p6), %v892_v57, 78 }
  0xea   : > { %vm901_vm5 = vcmp.eq.s32.totalorder %v893_v58, 78  ;;  %vm902_vm8 = vcmp.eq.s32.totalorder %v894_v59, 78  ;;  %vm903_vm9 = vcmp.eq.s32.totalorder %v895_v60, 78  ;;  %vm897_vm11 = vcmp.lt.s32.totalorder %v893_v58, 78  ;;  %vm2399_vm0 = vmor %vm896_vm7, %vm905_vm6 }
  0xeb   : > { %vm906_vm10 = vmand %vm901_vm5, %vm904_vm3  ;;  %vm898_vm13 = vcmp.lt.s32.totalorder %v894_v59, 78  ;;  %vm899_vm15 = vcmp.lt.s32.totalorder %v895_v60, 78  ;;  %v2410_v63 = vsel %vm2399_vm0, %v2228_v46, 4294967295  ;;  %v925_v0 = vsel %vm2399_vm0, %v2236_v5, 0.0 }
  0xec   : > { %vm907_vm12 = vmand %vm902_vm8, %vm904_vm3  ;;  %v929_v1 = vsel %vm2399_vm0, %v2238_v6, 0.0  ;;  %v933_v2 = vsel %vm2399_vm0, %v2240_v7, 0.0  ;;  %vm941_vm4 = vcmp.eq.s32.totalorder %v2410_v63, 0  ;;  %vm945_vm8 = vcmp.eq.s32.totalorder %v2410_v63, 1 }
  0xed   : > { %vm908_vm14 = vmand %vm903_vm9, %vm904_vm3 }
  0xee   : > { %vm2403_vm1 = vmor %vm897_vm11, %vm906_vm10 }
  0xef   : > { %vm2421_vm2 = vmor %vm898_vm13, %vm907_vm12  ;;  %v2428_v46 = vsel %vm2403_vm1, %v2230_v47, 4294967295  ;;  %v926_v5 = vsel %vm2403_vm1, %v2242_v9, 0.0  ;;  %v930_v6 = vsel %vm2403_vm1, %v2244_v10, 0.0  ;;  %v934_v7 = vsel %vm2403_vm1, %v2246_v11, 0.0 }
  0xf0   : > { %vm912_vm3 = vmor %vm899_vm15, %vm908_vm14  ;;  %v2442_v4 = vsel %vm2421_vm2, %v2232_v48, 4294967295  ;;  %v927_v47 = vsel %vm2421_vm2, %v2248_v12, 0.0  ;;  %v931_v9 = vsel %vm2421_vm2, %v2250_v13, 0.0  ;;  %v935_v10 = vsel %vm2421_vm2, %v2252_v14, 0.0 }
  0xf1   : > { %v2454_v11 = vsel %vm912_vm3, %v2234_v49, 4294967295  ;;  %v928_v8 = vsel %vm912_vm3, %v2256_v16, 0.0  ;;  %v932_v48 = vsel %vm912_vm3, %v2258_v17, 0.0  ;;  %v936_v22 = vsel %vm912_vm3, %v2260_v18, 0.0 }
  0xf2   : > { %v937_v12 = vsel %vm2399_vm0, %v2254_v15, 0.0  ;;  %v938_v13 = vsel %vm2403_vm1, %v2262_v19, 0.0  ;;  %v939_v14 = vsel %vm2421_vm2, %v2264_v20, 0.0  ;;  %v940_v49 = vsel %vm912_vm3, %v2266_v21, 0.0 }
  0xf3   : > { %vm942_vm5 = vcmp.eq.s32.totalorder %v2428_v46, 0  ;;  %vm943_vm6 = vcmp.eq.s32.totalorder %v2442_v4, 0  ;;  %vm944_vm7 = vcmp.eq.s32.totalorder %v2454_v11, 0  ;;  %vm946_vm9 = vcmp.eq.s32.totalorder %v2428_v46, 1 }
  0xf4   : > { %vm947_vm10 = vcmp.eq.s32.totalorder %v2442_v4, 1  ;;  %vm2716_vm11 = vcmp.eq.s32.totalorder %v2454_v11, 1  ;;  %vm949_vm12 = vcmp.eq.s32.totalorder %v2410_v63, 2  ;;  %vm950_vm13 = vcmp.eq.s32.totalorder %v2428_v46, 2 }
  0xf5   : > { %vm951_vm14 = vcmp.eq.s32.totalorder %v2442_v4, 2  ;;  %vm2715_vm15 = vcmp.eq.s32.totalorder %v2454_v11, 2  ;;  %vm953_vm0 = vcmp.eq.s32.totalorder %v2410_v63, 3  ;;  %vm954_vm1 = vcmp.eq.s32.totalorder %v2428_v46, 3 }
  0xf6   : > { %vm955_vm2 = vcmp.eq.s32.totalorder %v2442_v4, 3  ;;  %vm2714_vm3 = vcmp.eq.s32.totalorder %v2454_v11, 3  ;;  %v958_v15 = vsel %vm941_vm4, %v925_v0, 0.0  ;;  %v959_v16 = vsel %vm942_vm5, %v926_v5, 0.0 }
  0xf7   : > { %v960_v17 = vsel %vm943_vm6, %v927_v47, 0.0  ;;  %v961_v18 = vsel %vm944_vm7, %v928_v8, 0.0  ;;  %v962_v19 = vsel %vm945_vm8, %v929_v1, 0.0  ;;  %v963_v20 = vsel %vm946_vm9, %v930_v6, 0.0 }
  0xf8   : > { %v964_v21 = vsel %vm947_vm10, %v931_v9, 0.0  ;;  %v965_v23 = vsel %vm2716_vm11, %v932_v48, 0.0  ;;  %v966_v24 = vsel %vm949_vm12, %v933_v2, 0.0  ;;  %v967_v25 = vsel %vm950_vm13, %v934_v7, 0.0 }
  0xf9   : > { %v968_v26 = vsel %vm951_vm14, %v935_v10, 0.0  ;;  %v969_v27 = vsel %vm2715_vm15, %v936_v22, 0.0  ;;  %v970_v28 = vsel %vm953_vm0, %v937_v12, 0.0  ;;  %v971_v29 = vsel %vm954_vm1, %v938_v13, 0.0 }
  0xfa   : > { %v972_v30 = vsel %vm955_vm2, %v939_v14, 0.0  ;;  %v973_v31 = vsel %vm2714_vm3, %v940_v49, 0.0  ;;  %v974_v32 = vadd.f32 %v959_v16, %v958_v15  ;;  %v983_v33 = vadd.f32 %v963_v20, %v962_v19 }
  0xfb   : > { %v992_v34 = vadd.f32 %v967_v25, %v966_v24  ;;  %v1001_v35 = vadd.f32 %v971_v29, %v970_v28  ;;  %v1024_v36 = vadd.f32 %v926_v5, %v925_v0  ;;  %v1033_v37 = vadd.f32 %v930_v6, %v929_v1 }
  0xfc   : > { %v1042_v38 = vadd.f32 %v934_v7, %v933_v2  ;;  %v1051_v39 = vadd.f32 %v938_v13, %v937_v12  ;;  %v975_v40 = vadd.f32 %v974_v32, %v960_v17  ;;  %v984_v41 = vadd.f32 %v983_v33, %v964_v21 }
  0xfd   : > { %v993_v42 = vadd.f32 %v992_v34, %v968_v26  ;;  %v1002_v43 = vadd.f32 %v1001_v35, %v972_v30  ;;  %v1025_v44 = vadd.f32 %v1024_v36, %v927_v47  ;;  %v1034_v45 = vadd.f32 %v1033_v37, %v931_v9 }
  0xfe   : > { %v1043_v50 = vadd.f32 %v1042_v38, %v935_v10  ;;  %v1052_v51 = vadd.f32 %v1051_v39, %v939_v14  ;;  %v976_v52 = vadd.f32 %v975_v40, %v961_v18  ;;  %v985_v53 = vadd.f32 %v984_v41, %v965_v23 }
  0xff   : > { %v994_v54 = vadd.f32 %v993_v42, %v969_v27  ;;  %v1003_v55 = vadd.f32 %v1002_v43, %v973_v31  ;;  %v1026_v56 = vadd.f32 %v1025_v44, %v928_v8  ;;  %v1035_v57 = vadd.f32 %v1034_v45, %v932_v48  ;;  %v957_v44 = vld [vmem:[%s2196_s8] sm:$0xf] }
 0x100   : > { %v1044_v58 = vadd.f32 %v1043_v50, %v936_v22  ;;  %v1053_v59 = vadd.f32 %v1052_v51, %v940_v49  ;;  %v977_v60 = vrot.slane %v976_v52, 4  ;;  %v986_v61 = vrot.slane %v985_v53, 4  ;;  %v1023_v51 = vld [vmem:[%s2198_s30] sm:$0xf] }
 0x101   : > { %v995_v62 = vrot.slane %v994_v54, 4  ;;  %v1004_v0 = vrot.slane %v1003_v55, 4  ;;  %vm1014_vm3 = vcmask 1041409   ;;  %v1027_v1 = vrot.slane %v1026_v56, 4 }
 0x102   : > { %v1036_v2 = vrot.slane %v1035_v57, 4  ;;  %v1045_v3 = vrot.slane %v1044_v58, 4  ;;  %v1054_v5 = vrot.slane %v1053_v59, 4  ;;  %v978_v6 = vadd.f32 %v977_v60, %v976_v52 }
 0x103   : > { %v987_v7 = vadd.f32 %v986_v61, %v985_v53  ;;  %v996_v47 = vadd.f32 %v995_v62, %v994_v54  ;;  %v1005_v9 = vadd.f32 %v1004_v0, %v1003_v55  ;;  %vm1016_vm15 = vcmask 1042434  }
 0x104   : > { %vm1018_vm11 = vcmask 1043459   ;;  %v1028_v10 = vadd.f32 %v1027_v1, %v1026_v56  ;;  %v1037_v8 = vadd.f32 %v1036_v2, %v1035_v57  ;;  %v1046_v48 = vadd.f32 %v1045_v3, %v1044_v58 }
 0x105   : > { %v1055_v22 = vadd.f32 %v1054_v5, %v1053_v59  ;;  %v979_v12 = vrot.slane %v978_v6, 2  ;;  %v988_v13 = vrot.slane %v987_v7, 2  ;;  %v997_v14 = vrot.slane %v996_v47, 2 }
 0x106   : > { %v1006_v49 = vrot.slane %v1005_v9, 2  ;;  %v1029_v15 = vrot.slane %v1028_v10, 2  ;;  %v1038_v16 = vrot.slane %v1037_v8, 2  ;;  %v1047_v17 = vrot.slane %v1046_v48, 2 }
 0x107   : > { %v1056_v18 = vrot.slane %v1055_v22, 2  ;;  %v980_v19 = vadd.f32 %v979_v12, %v978_v6  ;;  %v989_v20 = vadd.f32 %v988_v13, %v987_v7  ;;  %v998_v21 = vadd.f32 %v997_v14, %v996_v47 }
 0x108   : > { %v1007_v23 = vadd.f32 %v1006_v49, %v1005_v9  ;;  %v1030_v24 = vadd.f32 %v1029_v15, %v1028_v10  ;;  %v1039_v25 = vadd.f32 %v1038_v16, %v1037_v8  ;;  %v1048_v26 = vadd.f32 %v1047_v17, %v1046_v48 }
 0x109   : > { %v1057_v27 = vadd.f32 %v1056_v18, %v1055_v22  ;;  %v981_v28 = vrot.slane %v980_v19, 1  ;;  %v990_v29 = vrot.slane %v989_v20, 1  ;;  %v999_v30 = vrot.slane %v998_v21, 1 }
 0x10a   : > { %v1008_v31 = vrot.slane %v1007_v23, 1  ;;  %v1031_v32 = vrot.slane %v1030_v24, 1  ;;  %v1040_v33 = vrot.slane %v1039_v25, 1  ;;  %v1049_v34 = vrot.slane %v1048_v26, 1 }
 0x10b   : > { %v1058_v35 = vrot.slane %v1057_v27, 1  ;;  %v982_v36 = vadd.f32 %v981_v28, %v980_v19  ;;  %v991_v37 = vadd.f32 %v990_v29, %v989_v20  ;;  %v1000_v38 = vadd.f32 %v999_v30, %v998_v21 }
 0x10c   : > { %v1009_v39 = vadd.f32 %v1008_v31, %v1007_v23  ;;  %v1032_v40 = vadd.f32 %v1031_v32, %v1030_v24  ;;  %v1041_v41 = vadd.f32 %v1040_v33, %v1039_v25  ;;  %v1050_v42 = vadd.f32 %v1049_v34, %v1048_v26 }
 0x10d   : > { %v1059_v43 = vadd.f32 %v1058_v35, %v1057_v27  ;;  %v1015_v45 = vsel %vm1014_vm3, %v991_v37, %v982_v36  ;;  %v1939_v53 = vmov 0.0  }
 0x10e   : > { %v1017_v50 = vsel %vm1016_vm15, %v1000_v38, %v1015_v45  ;;  %v1064_v52 = vsel %vm1014_vm3, %v1041_v41, %v1032_v40  ;;  %v1460_v54 = vsel %vm941_vm4, 1.0, %v1939_v53  ;;  %v1461_v57 = vsel %vm942_vm5, 1.0, %v1939_v53 }
 0x10f   : > { %v1019_v55 = vsel %vm1018_vm11, %v1009_v39, %v1017_v50  ;;  %v1065_v56 = vsel %vm1016_vm15, %v1050_v42, %v1064_v52  ;;  %v1464_v58 = vsel %vm945_vm8, 1.0, %v1939_v53  ;;  %v1465_v61 = vsel %vm946_vm9, 1.0, %v1939_v53 }
 0x110   : > { %v1021_v59 = vadd.f32 %v1019_v55, %v957_v44  ;;  %v1066_v60 = vsel %vm1018_vm11, %v1059_v43, %v1065_v56  ;;  %v1468_v62 = vsel %vm949_vm12, 1.0, %v1939_v53  ;;  %v1462_v1 = vsel %vm943_vm6, 1.0, %v1939_v53  ;;  %v1070_v43 = vld [vmem:[%s2200_s0] sm:$0xf] }
 0x111   : > { %v1068_v0 = vadd.f32 %v1066_v60, %v1023_v51  ;;  %v1466_v2 = vsel %vm947_vm10, 1.0, %v1939_v53  ;;  %v1469_v3 = vsel %vm950_vm13, 1.0, %v1939_v53  ;;  %v1470_v5 = vsel %vm951_vm14, 1.0, %v1939_v53 }
 0x112   : > { %1022 = vst [vmem:[%s2196_s8] sm:$0xf] %v1021_v59  ;;  %v1472_v6 = vsel %vm953_vm0, 1.0, %v1939_v53  ;;  %v1473_v7 = vsel %vm954_vm1, 1.0, %v1939_v53  ;;  %v1474_v47 = vsel %vm955_vm2, 1.0, %v1939_v53  ;;  %v1103_v9 = vadd.f32 %v1461_v57, %v1460_v54 }
 0x113   : > { %1069 = vst [vmem:[%s2198_s30] sm:$0xf] %v1068_v0  ;;  %v1112_v10 = vadd.f32 %v1465_v61, %v1464_v58  ;;  %v1121_v8 = vadd.f32 %v1469_v3, %v1468_v62  ;;  %v1130_v48 = vadd.f32 %v1473_v7, %v1472_v6  ;;  %v1463_v22 = vsel %vm944_vm7, 1.0, %v1939_v53 }
 0x114   : > { %vm2739_vm4 = vcmp.eq.s32.totalorder %v2454_v11, 1  ;;  %vm2740_vm5 = vcmp.eq.s32.totalorder %v2454_v11, 2  ;;  %vm2741_vm6 = vcmp.eq.s32.totalorder %v2454_v11, 3  ;;  %v1104_v13 = vadd.f32 %v1462_v1, %v1103_v9 }
 0x115   : > { %v1467_v12 = vsel %vm2739_vm4, 1.0, %v1939_v53  ;;  %v1471_v63 = vsel %vm2740_vm5, 1.0, %v1939_v53  ;;  %v1475_v46 = vsel %vm2741_vm6, 1.0, %v1939_v53  ;;  %v1113_v4 = vadd.f32 %v1466_v2, %v1112_v10 }
 0x116   : > { %v1122_v14 = vadd.f32 %v1470_v5, %v1121_v8  ;;  %v1131_v49 = vadd.f32 %v1474_v47, %v1130_v48  ;;  %v1105_v15 = vadd.f32 %v1463_v22, %v1104_v13 }
 0x117   : > { %v1114_v16 = vadd.f32 %v1467_v12, %v1113_v4 }
 0x118   : > { %v1123_v17 = vadd.f32 %v1471_v63, %v1122_v14  ;;  %v1132_v18 = vadd.f32 %v1475_v46, %v1131_v49  ;;  %v1106_v19 = vrot.slane %v1105_v15, 4 }
 0x119   : > { %v1115_v20 = vrot.slane %v1114_v16, 4 }
 0x11a   : > { %v1124_v21 = vrot.slane %v1123_v17, 4  ;;  %v1133_v23 = vrot.slane %v1132_v18, 4  ;;  %v1107_v24 = vadd.f32 %v1106_v19, %v1105_v15 }
 0x11b   : > { %v1116_v25 = vadd.f32 %v1115_v20, %v1114_v16 }
 0x11c   : > { %v1125_v26 = vadd.f32 %v1124_v21, %v1123_v17  ;;  %v1134_v27 = vadd.f32 %v1133_v23, %v1132_v18  ;;  %v1108_v28 = vrot.slane %v1107_v24, 2 }
 0x11d   : > { %v1117_v11 = vrot.slane %v1116_v25, 2 }
 0x11e   : > { %v1126_v29 = vrot.slane %v1125_v26, 2  ;;  %v1135_v30 = vrot.slane %v1134_v27, 2  ;;  %v1109_v31 = vadd.f32 %v1108_v28, %v1107_v24 }
 0x11f   : > { %v1118_v32 = vadd.f32 %v1117_v11, %v1116_v25 }
 0x120   : > { %v1127_v33 = vadd.f32 %v1126_v29, %v1125_v26  ;;  %v1136_v34 = vadd.f32 %v1135_v30, %v1134_v27  ;;  %v1110_v35 = vrot.slane %v1109_v31, 1 }
 0x121   : > { %v1119_v36 = vrot.slane %v1118_v32, 1 }
 0x122   : > { %v1128_v37 = vrot.slane %v1127_v33, 1  ;;  %v1137_v38 = vrot.slane %v1136_v34, 1  ;;  %v1111_v39 = vadd.f32 %v1110_v35, %v1109_v31 }
 0x123   : > { %v1120_v40 = vadd.f32 %v1119_v36, %v1118_v32 }
 0x124   : > { %v1129_v41 = vadd.f32 %v1128_v37, %v1127_v33  ;;  %v1138_v42 = vadd.f32 %v1137_v38, %v1136_v34 }
 0x125   : > { %v1143_v44 = vsel %vm1014_vm3, %v1120_v40, %v1111_v39 }
 0x126   : > { %v1144_v45 = vsel %vm1016_vm15, %v1129_v41, %v1143_v44 }
 0x127   : > { %v1145_v50 = vsel %vm1018_vm11, %v1138_v42, %v1144_v45 }
 0x128   : > { %v1147_v51 = vadd.f32 %v1145_v50, %v1070_v43 }
 0x12a   : > { %1148 = vst [vmem:[%s2200_s0] sm:$0xf] %v1147_v51 }
 0x12b PF: > { %s2742_s20 = sadd.s32 4294967295, %s1903_s24   ;;  %s2569_s10 = sshll.u32 %s1891_s21, 6 }
 0x12c   : > { %s2566_s6 = sand.u32 1, %s2742_s20   ;;  %s2575_s29 = scalar_lea.hbm %s2703_s3, %s2569_s10 }
 0x12d   : > { %s1188_s5 = sshll.u32 %s2198_s30, 4  ;;  %s2584_s7 = scalar_lea.hbm %s2702_s2, %s2569_s10  ;;  %s2578_s5 = int_to_ptr.vmem [resolvable:$true] %s1188_s5 }
 0x12e   : > { %s1155_s21 = scalar_lea.sflag [#allocation6], %s2566_s6  ;;  %s1701_s18 = scalar_lea.vmem %s2578_s5, 64 }
 0x12f   : > { %p1702_p7 = scmp.ne.s32.totalorder %s2578_s5, %s1701_s18  ;;  %s1940_s26 = smov [#allocation5]  }
 0x130   : > { %s1705_s28 = sshll.u32 %s1940_s26, 4  ;;  %s1706_s28 = int_to_ptr.vmem [resolvable:$false] %s1705_s28 }
 0x131   : > { %p1703_p8 = pnand %p1702_p7, %p2055_p11  ;;  %s1707_s30 = scalar_lea.vmem %s1706_s28, 128 }
 0x132   : > { %p1708_p10 = scmp.lt.s32.totalorder %s2578_s5, %s1706_s28  ;;  %p1709_p12 = scmp.lt.s32.totalorder %s1707_s30, %s1701_s18 }
 0x133   : > { %p1704_p9 = pneg %p1703_p8 }
 0x134   : > { %p1710_p13 = por %p1709_p12, %p1708_p10 }
 0x136   : > { %p1711_p1 = pnand %p1710_p13, %p1704_p9 }
 0x138   : > { %1714 = shalt.err (!%p1711_p1)
}
 0x139   : > { %s1715_s20 = scalar_lea.hbm %s2575_s29, 64  ;;  %s1719_s9 = scalar_lea.hbm %s2703_s3, 128 }
 0x13a   : > { %p1716_p2 = scmp.ne.s32.totalorder %s2575_s29, %s1715_s20  ;;  %p1720_p5 = scmp.lt.u32.totalorder %s2575_s29, %s2703_s3 }
 0x13b   : > { %p1721_p6 = scmp.lt.u32.totalorder %s1719_s9, %s1715_s20  ;;  %p1723_p8 = scmp.lt.u32.totalorder %s1715_s20, %s2575_s29 }
 0x13c   : > { %p1717_p3 = pnand %p1716_p2, %p2055_p11 }
 0x13d   : > { %p1722_p7 = por %p1721_p6, %p1720_p5 }
 0x13e   : > { %p1718_p4 = pneg %p1717_p3 }
 0x13f   : > { %p1724_p9 = por %p1723_p8, %p1722_p7 }
 0x141   : > { %p1725_p10 = pnand %p1724_p9, %p1718_p4 }
 0x143   : > { %1728 = shalt.err (!%p1725_p10)
}
 0x144   : > { %1498 = dma.vmem_to_hbm [thread:$0]  (%p2055_p11), %s2578_s5, 64, %s2575_s29, %s1155_s21  }
 0x145   : > { %s1174_s18 = sshll.u32 %s2196_s8, 4  ;;  %s2615_s20 = scalar_lea.hbm %s2704_s4, %s2569_s10  ;;  %s2617_s18 = int_to_ptr.vmem [resolvable:$true] %s1174_s18 }
 0x146   : > { %s1202_s27 = sshll.u32 %s2200_s0, 4  ;;  %s2743_s25 = sand.u32 1, %s1871_s16   ;;  %s1203_s27 = int_to_ptr.vmem [resolvable:$true] %s1202_s27 }
 0x147   : > { %s1150_s9 = scalar_lea.sflag [#allocation4], %s2743_s25  ;;  %s1729_s22 = scalar_lea.vmem %s2617_s18, 64 }
 0x148   : > { %p1730_p12 = scmp.ne.s32.totalorder %s2617_s18, %s1729_s22  ;;  %s1941_s29 = smov [#allocation3]  }
 0x149   : > { %s1733_s8 = sshll.u32 %s1941_s29, 4  ;;  %s1734_s8 = int_to_ptr.vmem [resolvable:$false] %s1733_s8 }
 0x14a   : > { %p1731_p13 = pnand %p1730_p12, %p2055_p11  ;;  %s1735_s5 = scalar_lea.vmem %s1734_s8, 128 }
 0x14b   : > { %p1736_p2 = scmp.lt.s32.totalorder %s2617_s18, %s1734_s8  ;;  %p1737_p3 = scmp.lt.s32.totalorder %s1735_s5, %s1729_s22 }
 0x14c   : > { %p1732_p1 = pneg %p1731_p13 }
 0x14d   : > { %p1738_p4 = por %p1737_p3, %p1736_p2 }
 0x14f   : > { %p1739_p5 = pnand %p1738_p4, %p1732_p1 }
 0x151   : > { %1742 = shalt.err (!%p1739_p5)
}
 0x152   : > { %s1743_s10 = scalar_lea.hbm %s2584_s7, 64  ;;  %s1747_s30 = scalar_lea.hbm %s2702_s2, 128 }
 0x153   : > { %p1744_p6 = scmp.ne.s32.totalorder %s2584_s7, %s1743_s10  ;;  %p1748_p9 = scmp.lt.u32.totalorder %s2584_s7, %s2702_s2 }
 0x154   : > { %p1749_p10 = scmp.lt.u32.totalorder %s1747_s30, %s1743_s10  ;;  %p1751_p13 = scmp.lt.u32.totalorder %s1743_s10, %s2584_s7 }
 0x155   : > { %p1745_p7 = pnand %p1744_p6, %p2055_p11 }
 0x156   : > { %p1750_p12 = por %p1749_p10, %p1748_p9 }
 0x157   : > { %p1746_p8 = pneg %p1745_p7 }
 0x158   : > { %p1752_p1 = por %p1751_p13, %p1750_p12 }
 0x15a   : > { %p1753_p2 = pnand %p1752_p1, %p1746_p8 }
 0x15c   : > { %1756 = shalt.err (!%p1753_p2)
}
 0x15d   : > { %1497 = dma.vmem_to_hbm [thread:$0]  (%p2055_p11), %s2617_s18, 64, %s2584_s7, %s1150_s9  }
 0x15e   : > { %s1757_s22 = scalar_lea.vmem %s1203_s27, 64  ;;  %s1942_s8 = smov [#allocation7]  }
 0x15f   : > { %p1758_p3 = scmp.ne.s32.totalorder %s1203_s27, %s1757_s22  ;;  %s1761_s5 = sshll.u32 %s1942_s8, 4  ;;  %s1762_s5 = int_to_ptr.vmem [resolvable:$false] %s1761_s5 }
 0x160   : > { %s1763_s10 = scalar_lea.vmem %s1762_s5, 128  ;;  %p1764_p6 = scmp.lt.s32.totalorder %s1203_s27, %s1762_s5 }
 0x161   : > { %p1759_p4 = pnand %p1758_p3, %p2055_p11  ;;  %p1765_p7 = scmp.lt.s32.totalorder %s1763_s10, %s1757_s22 }
 0x163   : > { %p1760_p5 = pneg %p1759_p4  ;;  %p1766_p8 = por %p1765_p7, %p1764_p6 }
 0x165   : > { %p1767_p9 = pnand %p1766_p8, %p1760_p5 }
 0x167   : > { %1770 = shalt.err (!%p1767_p9)
}
 0x168   : > { %s1771_s0 = scalar_lea.hbm %s2615_s20, 64  ;;  %s1775_s9 = scalar_lea.hbm %s2704_s4, 128 }
 0x169   : > { %p1772_p10 = scmp.ne.s32.totalorder %s2615_s20, %s1771_s0  ;;  %p1776_p1 = scmp.lt.u32.totalorder %s2615_s20, %s2704_s4 }
 0x16a   : > { %p1777_p2 = scmp.lt.u32.totalorder %s1775_s9, %s1771_s0  ;;  %p1779_p4 = scmp.lt.u32.totalorder %s1771_s0, %s2615_s20 }
 0x16b   : > { %p1773_p12 = pnand %p1772_p10, %p2055_p11 }
 0x16c   : > { %p1778_p3 = por %p1777_p2, %p1776_p1 }
 0x16d   : > { %p1774_p13 = pneg %p1773_p12 }
 0x16e   : > { %p1780_p5 = por %p1779_p4, %p1778_p3 }
 0x170   : > { %p1781_p6 = pnand %p1780_p5, %p1774_p13 }
 0x172   : > { %1784 = shalt.err (!%p1781_p6)
}
 0x173   : > { %1499 = dma.vmem_to_hbm [thread:$0]  (%p2055_p11), %s1203_s27, 64, %s2615_s20, %s1155_s21  }
 0x174 PF: > { %p1513_p7 = scmp.ge.s32.totalorder %s1903_s24, 2  ;;  %s1214_s30 = sand.u32 1, %s1867_s15  }
 0x175   : > { %s1215_s25 = scalar_lea.sflag [#allocation4], %s1214_s30 }
 0x176   : > { %p1504_p8 = pnand %p1513_p7, %p2063_p0 }
 0x178   : > { %1858 = dma.done.wait (!%p1504_p8), %s1215_s25, 64  }
 0x179   : > { %1860 = vsyncadd (!%p1504_p8), %s1215_s25, 4294967232  ;;  %s2744_s29 = sadd.s32 4294967294, %s1903_s24  }
 0x17a   : > { %s1223_s22 = sand.u32 1, %s2744_s29  }
 0x17b   : > { %s1224_s8 = scalar_lea.sflag [#allocation6], %s1223_s22 }
 0x17c   : > { %1862 = dma.done.wait (!%p1504_p8), %s1224_s8, 128  }
 0x17d   : > { %1864 = vsyncadd (!%p1504_p8), %s1224_s8, 4294967168  ;;  %s21_s24 = sadd.s32 1, %s1903_s24   ;;  %s2745_s20 = sld [smem:[#allocation10_spill]] }
 0x17e   : > { %p18_p11 = scmp.ge.s32.totalorder %s21_s24, 8   ;;  %s2746_s22 = sld [smem:[#allocation11_spill]] }
 0x17f   : > { %s2747_s13 = sld [smem:[#allocation12_spill]]  ;;  %s2748_s15 = smov %s1871_s16 }
 0x180   : > { %s2749_s16 = smov %s1875_s17  ;;  %s2750_s17 = smov %s2050_s11 }
 0x181   : > { %s2751_s18 = smov %s1883_s19  ;;  %s2752_s19 = smov %s2053_s12 }
 0x182   : > { %s2753_s21 = smov %s1899_s23  ;;  %20 = sbr.rel (!%p18_p11) target bundleno = 10 (0xa), region = 197 }
 0x185   : > { %s2754_s23 = smov %s2747_s13 }
 0x189   :  { %1238 = vsyncpa [#allocation4], 1 }
 0x18a   :  { %1240 = vsyncpa [#allocation4 + $0x1], 1 }
 0x18b   :  { %1241 = vsyncpa [#allocation6], 1 }
 0x18c   :  { %1243 = vsyncpa [#allocation6 + $0x1], 1 }

</bundles_post_ra>
